<compile_context>
chip_gen: v7x
topology: tpu7x:2x2x1
jax: 0.10.0
libtpu: 0.0.40
codegen_flags: <defaults>
</compile_context>

<pallas_src>
import jax
import jax.numpy as jnp
from jax.experimental import pallas as pl
from jax.experimental.pallas import tpu as pltpu

WINDOW_SIZE = 11
SIGMA = 1.5
_C1 = 0.01 ** 2
_C2 = 0.03 ** 2


def _gaussian_1d(window_size: int, sigma: float) -> jnp.ndarray:
    # Matches pytorch_ssim.gaussian: exp(-(x - ws//2)^2 / (2 sigma^2)), normalized.
    xs = jnp.arange(window_size, dtype=jnp.float32)
    g = jnp.exp(-((xs - window_size // 2) ** 2) / (2.0 * sigma ** 2))
    return g / jnp.sum(g)


def _band_matrix(size: int, g: jnp.ndarray, window_size: int) -> jnp.ndarray:
    # A[i, k] = g[k - i + ws//2] for |k - i| <= ws//2 (and k in range), else 0.
    # A @ x == 1-D cross-correlation of x with g along rows, with zero padding ws//2.
    half = window_size // 2
    i = jnp.arange(size)[:, None]
    k = jnp.arange(size)[None, :]
    d = k - i + half
    valid = (d >= 0) & (d < window_size)
    idx = jnp.clip(d, 0, window_size - 1)
    return jnp.where(valid, g[idx], 0.0).astype(jnp.float32)


def _vmem_cap_bytes() -> int:
    # Generation-aware VMEM budget: ~85% of physical per-TC VMEM (v5e/v6e 128 MiB, v7x 64 MiB).
    try:
        info = pltpu.get_tpu_info()
        cap = getattr(info, "vmem_capacity_bytes", None)
        if cap:
            return int(cap * 0.85)
    except Exception:
        pass
    return 48 << 20  # conservative fallback that also fits a v7x TensorCore


def _pick_block_planes(P, H, W, in_itemsizes, blur_bytes, cap_bytes) -> int:
    """Largest Bp that divides P, keeps >=2 grid steps (v7x megacore), and fits VMEM."""
    def est(bp):
        io = 2 * sum(in_itemsizes) * bp * H * W          # 4 double-buffered input streams
        bands = 2 * (H * H + W * W) * blur_bytes         # resident band matrices (double-buffered)
        tmp = 30 * bp * H * W * 4                        # f32 temporaries (maps, stacked, blurs)
        out = 2 * bp * 128 * 4                           # partial-sum tiles
        return io + bands + tmp + out + (2 << 20)        # + internal scratch slack
    for bp in (8, 4, 2, 1):
        if P % bp:
            continue
        if P >= 2 and P // bp < 2:                       # keep grid >= 2 for v7x's two TCs
            continue
        if est(bp) <= cap_bytes:
            return bp
    return 1


def _make_kernel(Bp: int, H: int, W: int, issigmoid: bool, blur_bf16: bool):
    blur_dtype = jnp.bfloat16 if blur_bf16 else jnp.float32

    def kernel(p_ref, r_ref, pbd_ref, rbd_ref, ah_ref, aw_ref, out_ref):
        # p_ref/r_ref/pbd_ref/rbd_ref: (Bp, H, W) blocks in their ORIGINAL dtypes; cast here.
        # ah_ref: (H, H), aw_ref: (W, W) gaussian band matrices (blur_dtype), grid-resident.
        # out_ref: (Bp, 1, 128) f32; lanes 0..5 of each plane's row carry the partial sums.
        z3 = p_ref[...].astype(jnp.float32)              # (Bp, H, W)
        y3 = r_ref[...].astype(jnp.float32)

        if issigmoid:
            x3 = jax.nn.sigmoid(z3)
            # Stable BCE-with-logits: max(z,0) - z*y + log(1 + exp(-|z|))
            bce_map = jnp.maximum(z3, 0.0) - z3 * y3 + jnp.log(1.0 + jnp.exp(-jnp.abs(z3)))
        else:
            x3 = z3
            bce_map = -(y3 * jnp.maximum(jnp.log(x3), -100.0)
                        + (1.0 - y3) * jnp.maximum(jnp.log(1.0 - x3), -100.0))

        xy3 = x3 * y3
        d = pbd_ref[...].astype(jnp.float32) - rbd_ref[...].astype(jnp.float32) * (1.0 / 255.0)
        d2 = d * d

        ah = ah_ref[...]
        aw = aw_ref[...]

        # --- SSIM blur inputs: stack all 5*Bp (H,W) maps along the sublane axis, casting each
        # piece to the blur dtype BEFORE the concat, so the W-direction blur is ONE MXU matmul.
        pieces = []
        for q3 in (x3, y3, x3 * x3, y3 * y3, xy3):       # quantity-major, plane-minor
            for b in range(Bp):
                pieces.append(q3[b].astype(blur_dtype))
        stacked = jnp.concatenate(pieces, axis=0)        # (5*Bp*H, W)
        right = jnp.dot(stacked, aw, preferred_element_type=jnp.float32)  # (5*Bp*H, W) f32

        lane = jax.lax.broadcasted_iota(jnp.int32, (1, 1, 128), 2)
        rows = []
        for b in range(Bp):
            def blur(i, b=b):
                start = (i * Bp + b) * H
                sub = right[start:start + H, :].astype(blur_dtype)      # (H, W)
                return jnp.dot(ah, sub, preferred_element_type=jnp.float32)

            mu1, mu2 = blur(0), blur(1)
            e_x2, e_y2, e_xy = blur(2), blur(3), blur(4)

            mu1_sq = mu1 * mu1
            mu2_sq = mu2 * mu2
            mu1_mu2 = mu1 * mu2
            sigma1_sq = e_x2 - mu1_sq
            sigma2_sq = e_y2 - mu2_sq
            sigma12 = e_xy - mu1_mu2
            num = (2.0 * mu1_mu2 + _C1) * (2.0 * sigma12 + _C2)
            den = (mu1_sq + mu2_sq + _C1) * (sigma1_sq + sigma2_sq + _C2)
            ssim = jnp.sum(num * pl.reciprocal(den, approx=True))

            vals6 = (jnp.sum(bce_map[b]),    # BCE partial
                     ssim,                   # SSIM partial
                     jnp.sum(xy3[b]),        # IoU intersection
                     jnp.sum(x3[b]),         # IoU pred sum
                     jnp.sum(y3[b]),         # IoU target sum
                     jnp.sum(d2[b]))         # boundary MSE partial

            row = jnp.zeros((1, 1, 128), jnp.float32)
            for idx, v in enumerate(vals6):
                row = jnp.where(lane == idx, v, row)
            rows.append(row)

        out_ref[...] = jnp.concatenate(rows, axis=0)     # (Bp, 1, 128)

    return kernel


def bce_ssim_iou_bd(pmask, rmask, pbd, rbd, *, issigmoid: bool = False,
                    blur_bf16: bool = True, input_buffering: int = 2):
    """BCE_SSIM_IOU_BD forward (all reductions = mean). Inputs are NCHW, same shape, any dtype."""
    N, C, H, W = pmask.shape
    assert rmask.shape == pmask.shape and pbd.shape == pmask.shape and rbd.shape == pmask.shape
    P = N * C

    blur_dtype = jnp.bfloat16 if blur_bf16 else jnp.float32
    blur_bytes = 2 if blur_bf16 else 4
    g = _gaussian_1d(WINDOW_SIZE, SIGMA)
    ah = _band_matrix(H, g, WINDOW_SIZE).astype(blur_dtype)        # (H, H)
    aw = _band_matrix(W, g, WINDOW_SIZE).T.astype(blur_dtype)      # (W, W): blur = ah @ X @ aw

    # No dtype casts here (reshape of leading dims is free): the kernel casts per block, so bf16 /
    # integer sources keep their smaller HBM footprint through the pipelined DMA.
    pred = pmask.reshape(P, H, W)
    targ = rmask.reshape(P, H, W)
    pbd_r = pbd.reshape(P, H, W)
    rbd_r = rbd.reshape(P, H, W)

    in_itemsizes = [x.dtype.itemsize for x in (pred, targ, pbd_r, rbd_r)]
    cap = _vmem_cap_bytes()
    Bp = _pick_block_planes(P, H, W, in_itemsizes, blur_bytes, cap)
    grid = (P // Bp,)

    def plane_spec():
        kwargs = {}
        if input_buffering and input_buffering != 2:
            # Optional deeper buffering (e.g. 3) if xprof shows exposed DMA on v6e/v7x.
            kwargs["pipeline_mode"] = pl.Buffered(int(input_buffering))
        return pl.BlockSpec((Bp, H, W), lambda p: (p, 0, 0), **kwargs)

    ah_spec = pl.BlockSpec((H, H), lambda p: (0, 0))
    aw_spec = pl.BlockSpec((W, W), lambda p: (0, 0))
    out_spec = pl.BlockSpec((Bp, 1, 128), lambda p: (p, 0, 0))

    in_bytes = sum(int(x.size) * x.dtype.itemsize for x in (pred, targ, pbd_r, rbd_r))
    flops_per_plane = 10 * H * W * W + 10 * H * H * W + 80 * H * W
    cost = pl.CostEstimate(
        flops=P * flops_per_plane,
        transcendentals=P * 3 * H * W,
        bytes_accessed=in_bytes + P * 128 * 4 + (H * H + W * W) * blur_bytes,
    )

    partials = pl.pallas_call(
        _make_kernel(Bp, H, W, issigmoid, blur_bf16),
        out_shape=jax.ShapeDtypeStruct((P, 1, 128), jnp.float32),
        grid_spec=pltpu.PrefetchScalarGridSpec(
            num_scalar_prefetch=0,
            grid=grid,
            in_specs=[plane_spec(), plane_spec(), plane_spec(), plane_spec(), ah_spec, aw_spec],
            out_specs=out_spec,
        ),
        compiler_params=pltpu.CompilerParams(
            dimension_semantics=("parallel",),
            vmem_limit_bytes=int(cap),
        ),
        cost_estimate=cost,
    )(pred, targ, pbd_r, rbd_r, ah, aw)

    # Final tiny reduction in plain JAX (keeps the grid axis 'parallel' / megacore-friendly).
    sums = partials[:, 0, :6]                             # (P, 6)
    total = float(N * C * H * W)
    loss_ce = jnp.sum(sums[:, 0]) / total
    loss_ssim = 1.0 - jnp.sum(sums[:, 1]) / total
    iand = jnp.sum(sums[:, 2].reshape(N, C), axis=1)
    psum = jnp.sum(sums[:, 3].reshape(N, C), axis=1)
    tsum = jnp.sum(sums[:, 4].reshape(N, C), axis=1)
    loss_iou = jnp.mean(1.0 - iand / (psum + tsum - iand))
    loss_bd = jnp.sum(sums[:, 5]) / total
    return loss_ce + loss_ssim + loss_iou + loss_bd


if __name__ == "__main__":
    key = jax.random.PRNGKey(0)
    k1, k2, k3, k4 = jax.random.split(key, 4)
    N, C, H, W = 4, 1, 16, 16
    # pmask/pbd: probabilities in (0,1) (bf16 to exercise the no-wrapper-cast path);
    # rmask: binary GT mask; rbd: 0..255 boundary GT (as in the torch module).
    pmask = jax.nn.sigmoid(jax.random.normal(k1, (N, C, H, W), dtype=jnp.float32)).astype(jnp.bfloat16)
    rmask = (jax.random.uniform(k2, (N, C, H, W), dtype=jnp.float32) > 0.5).astype(jnp.bfloat16)
    pbd = jax.nn.sigmoid(jax.random.normal(k3, (N, C, H, W), dtype=jnp.float32)).astype(jnp.bfloat16)
    rbd = jnp.round(jax.random.uniform(k4, (N, C, H, W), dtype=jnp.float32) * 255.0)

    loss = bce_ssim_iou_bd(pmask, rmask, pbd, rbd)
    jax.block_until_ready(loss)
    print("KERNEL_OK")
</pallas_src>

<mosaic_0001>
module attributes {stable_mosaic.version = 11 : i64} {
  func.func @kernel(%arg0: i32, %arg1: memref<2x16x16xbf16, #tpu.memory_space<vmem>>, %arg2: memref<2x16x16xbf16, #tpu.memory_space<vmem>>, %arg3: memref<2x16x16xbf16, #tpu.memory_space<vmem>>, %arg4: memref<2x16x16xf32, #tpu.memory_space<vmem>>, %arg5: memref<16x16xbf16, #tpu.memory_space<vmem>>, %arg6: memref<16x16xbf16, #tpu.memory_space<vmem>>, %arg7: memref<2x1x128xf32, #tpu.memory_space<vmem>>) attributes {dimension_semantics = [#tpu.dimension_semantics<parallel>], iteration_bounds = array<i64: 2>, scalar_prefetch = 0 : i64, scratch_operands = 0 : i64, tpu.core_type = #tpu.core_type<tc>, window_params = [{transform_indices = @transform_0, window_bounds = array<i64: 2, 16, 16>}, {transform_indices = @transform_1, window_bounds = array<i64: 2, 16, 16>}, {transform_indices = @transform_2, window_bounds = array<i64: 2, 16, 16>}, {transform_indices = @transform_3, window_bounds = array<i64: 2, 16, 16>}, {pipeline_mode = #tpu.pipeline_mode<synchronous>, transform_indices = @transform_4, window_bounds = array<i64: 16, 16>}, {pipeline_mode = #tpu.pipeline_mode<synchronous>, transform_indices = @transform_5, window_bounds = array<i64: 16, 16>}, {transform_indices = @transform_6, window_bounds = array<i64: 2, 1, 128>}]} {
    %c0 = arith.constant 0 : index
    %c0_0 = arith.constant 0 : index
    %c0_1 = arith.constant 0 : index
    %0 = vector.load %arg1[%c0, %c0_0, %c0_1] : memref<2x16x16xbf16, #tpu.memory_space<vmem>>, vector<2x16x16xbf16>
    %1 = arith.extf %0 : vector<2x16x16xbf16> to vector<2x16x16xf32>
    %c0_2 = arith.constant 0 : index
    %c0_3 = arith.constant 0 : index
    %c0_4 = arith.constant 0 : index
    %2 = vector.load %arg2[%c0_2, %c0_3, %c0_4] : memref<2x16x16xbf16, #tpu.memory_space<vmem>>, vector<2x16x16xbf16>
    %3 = arith.extf %2 : vector<2x16x16xbf16> to vector<2x16x16xf32>
    %4 = math.log %1 : vector<2x16x16xf32>
    %cst = arith.constant -1.000000e+02 : f32
    %5 = vector.broadcast %cst : f32 to vector<2x16x16xf32>
    %6 = arith.maximumf %4, %5 : vector<2x16x16xf32>
    %7 = arith.mulf %3, %6 : vector<2x16x16xf32>
    %cst_5 = arith.constant 1.000000e+00 : f32
    %8 = vector.broadcast %cst_5 : f32 to vector<2x16x16xf32>
    %9 = arith.subf %8, %3 : vector<2x16x16xf32>
    %cst_6 = arith.constant 1.000000e+00 : f32
    %10 = vector.broadcast %cst_6 : f32 to vector<2x16x16xf32>
    %11 = arith.subf %10, %1 : vector<2x16x16xf32>
    %12 = math.log %11 : vector<2x16x16xf32>
    %cst_7 = arith.constant -1.000000e+02 : f32
    %13 = vector.broadcast %cst_7 : f32 to vector<2x16x16xf32>
    %14 = arith.maximumf %12, %13 : vector<2x16x16xf32>
    %15 = arith.mulf %9, %14 : vector<2x16x16xf32>
    %16 = arith.addf %7, %15 : vector<2x16x16xf32>
    %cst_8 = arith.constant 0.000000e+00 : f32
    %17 = vector.broadcast %cst_8 : f32 to vector<2x16x16xf32>
    %18 = arith.subf %17, %16 : vector<2x16x16xf32>
    %19 = arith.mulf %1, %3 : vector<2x16x16xf32>
    %c0_9 = arith.constant 0 : index
    %c0_10 = arith.constant 0 : index
    %c0_11 = arith.constant 0 : index
    %20 = vector.load %arg3[%c0_9, %c0_10, %c0_11] : memref<2x16x16xbf16, #tpu.memory_space<vmem>>, vector<2x16x16xbf16>
    %21 = arith.extf %20 : vector<2x16x16xbf16> to vector<2x16x16xf32>
    %c0_12 = arith.constant 0 : index
    %c0_13 = arith.constant 0 : index
    %c0_14 = arith.constant 0 : index
    %22 = vector.load %arg4[%c0_12, %c0_13, %c0_14] : memref<2x16x16xf32, #tpu.memory_space<vmem>>, vector<2x16x16xf32>
    %cst_15 = arith.constant 0.00392156886 : f32
    %23 = vector.broadcast %cst_15 : f32 to vector<2x16x16xf32>
    %24 = arith.mulf %22, %23 : vector<2x16x16xf32>
    %25 = arith.subf %21, %24 : vector<2x16x16xf32>
    %26 = arith.mulf %25, %25 : vector<2x16x16xf32>
    %c0_16 = arith.constant 0 : index
    %c0_17 = arith.constant 0 : index
    %27 = vector.load %arg5[%c0_16, %c0_17] : memref<16x16xbf16, #tpu.memory_space<vmem>>, vector<16x16xbf16>
    %c0_18 = arith.constant 0 : index
    %c0_19 = arith.constant 0 : index
    %28 = vector.load %arg6[%c0_18, %c0_19] : memref<16x16xbf16, #tpu.memory_space<vmem>>, vector<16x16xbf16>
    %29 = arith.mulf %1, %1 : vector<2x16x16xf32>
    %30 = arith.mulf %3, %3 : vector<2x16x16xf32>
    %31 = vector.extract_strided_slice %1 {offsets = [0, 0, 0], sizes = [1, 16, 16], strides = [1, 1, 1]} : vector<2x16x16xf32> to vector<1x16x16xf32>
    %32 = vector.shape_cast %31 : vector<1x16x16xf32> to vector<16x16xf32>
    %33 = arith.truncf %32 : vector<16x16xf32> to vector<16x16xbf16>
    %34 = vector.extract_strided_slice %1 {offsets = [1, 0, 0], sizes = [1, 16, 16], strides = [1, 1, 1]} : vector<2x16x16xf32> to vector<1x16x16xf32>
    %35 = vector.shape_cast %34 : vector<1x16x16xf32> to vector<16x16xf32>
    %36 = arith.truncf %35 : vector<16x16xf32> to vector<16x16xbf16>
    %37 = vector.extract_strided_slice %3 {offsets = [0, 0, 0], sizes = [1, 16, 16], strides = [1, 1, 1]} : vector<2x16x16xf32> to vector<1x16x16xf32>
    %38 = vector.shape_cast %37 : vector<1x16x16xf32> to vector<16x16xf32>
    %39 = arith.truncf %38 : vector<16x16xf32> to vector<16x16xbf16>
    %40 = vector.extract_strided_slice %3 {offsets = [1, 0, 0], sizes = [1, 16, 16], strides = [1, 1, 1]} : vector<2x16x16xf32> to vector<1x16x16xf32>
    %41 = vector.shape_cast %40 : vector<1x16x16xf32> to vector<16x16xf32>
    %42 = arith.truncf %41 : vector<16x16xf32> to vector<16x16xbf16>
    %43 = vector.extract_strided_slice %29 {offsets = [0, 0, 0], sizes = [1, 16, 16], strides = [1, 1, 1]} : vector<2x16x16xf32> to vector<1x16x16xf32>
    %44 = vector.shape_cast %43 : vector<1x16x16xf32> to vector<16x16xf32>
    %45 = arith.truncf %44 : vector<16x16xf32> to vector<16x16xbf16>
    %46 = vector.extract_strided_slice %29 {offsets = [1, 0, 0], sizes = [1, 16, 16], strides = [1, 1, 1]} : vector<2x16x16xf32> to vector<1x16x16xf32>
    %47 = vector.shape_cast %46 : vector<1x16x16xf32> to vector<16x16xf32>
    %48 = arith.truncf %47 : vector<16x16xf32> to vector<16x16xbf16>
    %49 = vector.extract_strided_slice %30 {offsets = [0, 0, 0], sizes = [1, 16, 16], strides = [1, 1, 1]} : vector<2x16x16xf32> to vector<1x16x16xf32>
    %50 = vector.shape_cast %49 : vector<1x16x16xf32> to vector<16x16xf32>
    %51 = arith.truncf %50 : vector<16x16xf32> to vector<16x16xbf16>
    %52 = vector.extract_strided_slice %30 {offsets = [1, 0, 0], sizes = [1, 16, 16], strides = [1, 1, 1]} : vector<2x16x16xf32> to vector<1x16x16xf32>
    %53 = vector.shape_cast %52 : vector<1x16x16xf32> to vector<16x16xf32>
    %54 = arith.truncf %53 : vector<16x16xf32> to vector<16x16xbf16>
    %55 = vector.extract_strided_slice %19 {offsets = [0, 0, 0], sizes = [1, 16, 16], strides = [1, 1, 1]} : vector<2x16x16xf32> to vector<1x16x16xf32>
    %56 = vector.shape_cast %55 : vector<1x16x16xf32> to vector<16x16xf32>
    %57 = arith.truncf %56 : vector<16x16xf32> to vector<16x16xbf16>
    %58 = vector.extract_strided_slice %19 {offsets = [1, 0, 0], sizes = [1, 16, 16], strides = [1, 1, 1]} : vector<2x16x16xf32> to vector<1x16x16xf32>
    %59 = vector.shape_cast %58 : vector<1x16x16xf32> to vector<16x16xf32>
    %60 = arith.truncf %59 : vector<16x16xf32> to vector<16x16xbf16>
    %61 = tpu.concatenate %33, %36, %39, %42, %45, %48, %51, %54, %57, %60 in 0 : vector<16x16xbf16>, vector<16x16xbf16>, vector<16x16xbf16>, vector<16x16xbf16>, vector<16x16xbf16>, vector<16x16xbf16>, vector<16x16xbf16>, vector<16x16xbf16>, vector<16x16xbf16>, vector<16x16xbf16> -> vector<160x16xbf16>
    %cst_20 = arith.constant dense<0.000000e+00> : vector<160x16xf32>
    %62 = tpu.matmul %61, %28, %cst_20 {dimension_numbers = #tpu.dot_dimension_numbers<[1], [0], [0], [1], [0, 0, 1, 1], [], []>} : vector<160x16xbf16>, vector<16x16xbf16>, vector<160x16xf32> -> vector<160x16xf32>
    %63 = tpu.iota {dimensions = array<i32: 2>} : vector<1x1x128xi32>
    %64 = vector.extract_strided_slice %62 {offsets = [0, 0], sizes = [16, 16], strides = [1, 1]} : vector<160x16xf32> to vector<16x16xf32>
    %65 = arith.truncf %64 : vector<16x16xf32> to vector<16x16xbf16>
    %cst_21 = arith.constant dense<0.000000e+00> : vector<16x16xf32>
    %66 = tpu.matmul %27, %65, %cst_21 {dimension_numbers = #tpu.dot_dimension_numbers<[1], [0], [0], [1], [0, 0, 1, 1], [], []>} : vector<16x16xbf16>, vector<16x16xbf16>, vector<16x16xf32> -> vector<16x16xf32>
    %67 = vector.extract_strided_slice %62 {offsets = [32, 0], sizes = [16, 16], strides = [1, 1]} : vector<160x16xf32> to vector<16x16xf32>
    %68 = arith.truncf %67 : vector<16x16xf32> to vector<16x16xbf16>
    %cst_22 = arith.constant dense<0.000000e+00> : vector<16x16xf32>
    %69 = tpu.matmul %27, %68, %cst_22 {dimension_numbers = #tpu.dot_dimension_numbers<[1], [0], [0], [1], [0, 0, 1, 1], [], []>} : vector<16x16xbf16>, vector<16x16xbf16>, vector<16x16xf32> -> vector<16x16xf32>
    %70 = vector.extract_strided_slice %62 {offsets = [64, 0], sizes = [16, 16], strides = [1, 1]} : vector<160x16xf32> to vector<16x16xf32>
    %71 = arith.truncf %70 : vector<16x16xf32> to vector<16x16xbf16>
    %cst_23 = arith.constant dense<0.000000e+00> : vector<16x16xf32>
    %72 = tpu.matmul %27, %71, %cst_23 {dimension_numbers = #tpu.dot_dimension_numbers<[1], [0], [0], [1], [0, 0, 1, 1], [], []>} : vector<16x16xbf16>, vector<16x16xbf16>, vector<16x16xf32> -> vector<16x16xf32>
    %73 = vector.extract_strided_slice %62 {offsets = [96, 0], sizes = [16, 16], strides = [1, 1]} : vector<160x16xf32> to vector<16x16xf32>
    %74 = arith.truncf %73 : vector<16x16xf32> to vector<16x16xbf16>
    %cst_24 = arith.constant dense<0.000000e+00> : vector<16x16xf32>
    %75 = tpu.matmul %27, %74, %cst_24 {dimension_numbers = #tpu.dot_dimension_numbers<[1], [0], [0], [1], [0, 0, 1, 1], [], []>} : vector<16x16xbf16>, vector<16x16xbf16>, vector<16x16xf32> -> vector<16x16xf32>
    %76 = vector.extract_strided_slice %62 {offsets = [128, 0], sizes = [16, 16], strides = [1, 1]} : vector<160x16xf32> to vector<16x16xf32>
    %77 = arith.truncf %76 : vector<16x16xf32> to vector<16x16xbf16>
    %cst_25 = arith.constant dense<0.000000e+00> : vector<16x16xf32>
    %78 = tpu.matmul %27, %77, %cst_25 {dimension_numbers = #tpu.dot_dimension_numbers<[1], [0], [0], [1], [0, 0, 1, 1], [], []>} : vector<16x16xbf16>, vector<16x16xbf16>, vector<16x16xf32> -> vector<16x16xf32>
    %79 = arith.mulf %66, %66 : vector<16x16xf32>
    %80 = arith.mulf %69, %69 : vector<16x16xf32>
    %81 = arith.mulf %66, %69 : vector<16x16xf32>
    %82 = arith.subf %72, %79 : vector<16x16xf32>
    %83 = arith.subf %75, %80 : vector<16x16xf32>
    %84 = arith.subf %78, %81 : vector<16x16xf32>
    %cst_26 = arith.constant 2.000000e+00 : f32
    %85 = vector.broadcast %cst_26 : f32 to vector<16x16xf32>
    %86 = arith.mulf %85, %81 : vector<16x16xf32>
    %cst_27 = arith.constant 9.99999974E-5 : f32
    %87 = vector.broadcast %cst_27 : f32 to vector<16x16xf32>
    %88 = arith.addf %86, %87 : vector<16x16xf32>
    %cst_28 = arith.constant 2.000000e+00 : f32
    %89 = vector.broadcast %cst_28 : f32 to vector<16x16xf32>
    %90 = arith.mulf %89, %84 : vector<16x16xf32>
    %cst_29 = arith.constant 8.99999984E-4 : f32
    %91 = vector.broadcast %cst_29 : f32 to vector<16x16xf32>
    %92 = arith.addf %90, %91 : vector<16x16xf32>
    %93 = arith.mulf %88, %92 : vector<16x16xf32>
    %94 = arith.addf %79, %80 : vector<16x16xf32>
    %cst_30 = arith.constant 9.99999974E-5 : f32
    %95 = vector.broadcast %cst_30 : f32 to vector<16x16xf32>
    %96 = arith.addf %94, %95 : vector<16x16xf32>
    %97 = arith.addf %82, %83 : vector<16x16xf32>
    %cst_31 = arith.constant 8.99999984E-4 : f32
    %98 = vector.broadcast %cst_31 : f32 to vector<16x16xf32>
    %99 = arith.addf %97, %98 : vector<16x16xf32>
    %100 = arith.mulf %96, %99 : vector<16x16xf32>
    %101 = tpu.reciprocal %100 {approx = true} : vector<16x16xf32> -> vector<16x16xf32>
    %102 = arith.mulf %93, %101 : vector<16x16xf32>
    %103 = vector.shape_cast %102 : vector<16x16xf32> to vector<1x16x16xf32>
    %cst_32 = arith.constant dense<0.000000e+00> : vector<1xf32>
    %104 = vector.multi_reduction <add>, %103, %cst_32 [1, 2] : vector<1x16x16xf32> to vector<1xf32>
    %105 = vector.shape_cast %104 : vector<1xf32> to vector<1x1x1xf32>
    %106 = vector.extract %105[0, 0, 0] : f32 from vector<1x1x1xf32>
    %107 = vector.extract_strided_slice %18 {offsets = [0, 0, 0], sizes = [1, 16, 16], strides = [1, 1, 1]} : vector<2x16x16xf32> to vector<1x16x16xf32>
    %108 = vector.shape_cast %107 : vector<1x16x16xf32> to vector<16x16xf32>
    %109 = vector.shape_cast %108 : vector<16x16xf32> to vector<1x16x16xf32>
    %cst_33 = arith.constant dense<0.000000e+00> : vector<1xf32>
    %110 = vector.multi_reduction <add>, %109, %cst_33 [1, 2] : vector<1x16x16xf32> to vector<1xf32>
    %111 = vector.shape_cast %110 : vector<1xf32> to vector<1x1x1xf32>
    %112 = vector.extract %111[0, 0, 0] : f32 from vector<1x1x1xf32>
    %113 = vector.extract_strided_slice %19 {offsets = [0, 0, 0], sizes = [1, 16, 16], strides = [1, 1, 1]} : vector<2x16x16xf32> to vector<1x16x16xf32>
    %114 = vector.shape_cast %113 : vector<1x16x16xf32> to vector<16x16xf32>
    %115 = vector.shape_cast %114 : vector<16x16xf32> to vector<1x16x16xf32>
    %cst_34 = arith.constant dense<0.000000e+00> : vector<1xf32>
    %116 = vector.multi_reduction <add>, %115, %cst_34 [1, 2] : vector<1x16x16xf32> to vector<1xf32>
    %117 = vector.shape_cast %116 : vector<1xf32> to vector<1x1x1xf32>
    %118 = vector.extract %117[0, 0, 0] : f32 from vector<1x1x1xf32>
    %119 = vector.extract_strided_slice %1 {offsets = [0, 0, 0], sizes = [1, 16, 16], strides = [1, 1, 1]} : vector<2x16x16xf32> to vector<1x16x16xf32>
    %120 = vector.shape_cast %119 : vector<1x16x16xf32> to vector<16x16xf32>
    %121 = vector.shape_cast %120 : vector<16x16xf32> to vector<1x16x16xf32>
    %cst_35 = arith.constant dense<0.000000e+00> : vector<1xf32>
    %122 = vector.multi_reduction <add>, %121, %cst_35 [1, 2] : vector<1x16x16xf32> to vector<1xf32>
    %123 = vector.shape_cast %122 : vector<1xf32> to vector<1x1x1xf32>
    %124 = vector.extract %123[0, 0, 0] : f32 from vector<1x1x1xf32>
    %125 = vector.extract_strided_slice %3 {offsets = [0, 0, 0], sizes = [1, 16, 16], strides = [1, 1, 1]} : vector<2x16x16xf32> to vector<1x16x16xf32>
    %126 = vector.shape_cast %125 : vector<1x16x16xf32> to vector<16x16xf32>
    %127 = vector.shape_cast %126 : vector<16x16xf32> to vector<1x16x16xf32>
    %cst_36 = arith.constant dense<0.000000e+00> : vector<1xf32>
    %128 = vector.multi_reduction <add>, %127, %cst_36 [1, 2] : vector<1x16x16xf32> to vector<1xf32>
    %129 = vector.shape_cast %128 : vector<1xf32> to vector<1x1x1xf32>
    %130 = vector.extract %129[0, 0, 0] : f32 from vector<1x1x1xf32>
    %131 = vector.extract_strided_slice %26 {offsets = [0, 0, 0], sizes = [1, 16, 16], strides = [1, 1, 1]} : vector<2x16x16xf32> to vector<1x16x16xf32>
    %132 = vector.shape_cast %131 : vector<1x16x16xf32> to vector<16x16xf32>
    %133 = vector.shape_cast %132 : vector<16x16xf32> to vector<1x16x16xf32>
    %cst_37 = arith.constant dense<0.000000e+00> : vector<1xf32>
    %134 = vector.multi_reduction <add>, %133, %cst_37 [1, 2] : vector<1x16x16xf32> to vector<1xf32>
    %135 = vector.shape_cast %134 : vector<1xf32> to vector<1x1x1xf32>
    %136 = vector.extract %135[0, 0, 0] : f32 from vector<1x1x1xf32>
    %cst_38 = arith.constant 0.000000e+00 : f32
    %137 = vector.broadcast %cst_38 : f32 to vector<1x1x128xf32>
    %c0_i32 = arith.constant 0 : i32
    %138 = vector.broadcast %c0_i32 : i32 to vector<1x1x128xi32>
    %139 = arith.cmpi eq, %63, %138 : vector<1x1x128xi32>
    %140 = vector.broadcast %112 : f32 to vector<1x1x128xf32>
    %141 = arith.select %139, %140, %137 : vector<1x1x128xi1>, vector<1x1x128xf32>
    %c1_i32 = arith.constant 1 : i32
    %142 = vector.broadcast %c1_i32 : i32 to vector<1x1x128xi32>
    %143 = arith.cmpi eq, %63, %142 : vector<1x1x128xi32>
    %144 = vector.broadcast %106 : f32 to vector<1x1x128xf32>
    %145 = arith.select %143, %144, %141 : vector<1x1x128xi1>, vector<1x1x128xf32>
    %c2_i32 = arith.constant 2 : i32
    %146 = vector.broadcast %c2_i32 : i32 to vector<1x1x128xi32>
    %147 = arith.cmpi eq, %63, %146 : vector<1x1x128xi32>
    %148 = vector.broadcast %118 : f32 to vector<1x1x128xf32>
    %149 = arith.select %147, %148, %145 : vector<1x1x128xi1>, vector<1x1x128xf32>
    %c3_i32 = arith.constant 3 : i32
    %150 = vector.broadcast %c3_i32 : i32 to vector<1x1x128xi32>
    %151 = arith.cmpi eq, %63, %150 : vector<1x1x128xi32>
    %152 = vector.broadcast %124 : f32 to vector<1x1x128xf32>
    %153 = arith.select %151, %152, %149 : vector<1x1x128xi1>, vector<1x1x128xf32>
    %c4_i32 = arith.constant 4 : i32
    %154 = vector.broadcast %c4_i32 : i32 to vector<1x1x128xi32>
    %155 = arith.cmpi eq, %63, %154 : vector<1x1x128xi32>
    %156 = vector.broadcast %130 : f32 to vector<1x1x128xf32>
    %157 = arith.select %155, %156, %153 : vector<1x1x128xi1>, vector<1x1x128xf32>
    %c5_i32 = arith.constant 5 : i32
    %158 = vector.broadcast %c5_i32 : i32 to vector<1x1x128xi32>
    %159 = arith.cmpi eq, %63, %158 : vector<1x1x128xi32>
    %160 = vector.broadcast %136 : f32 to vector<1x1x128xf32>
    %161 = arith.select %159, %160, %157 : vector<1x1x128xi1>, vector<1x1x128xf32>
    %162 = vector.extract_strided_slice %62 {offsets = [16, 0], sizes = [16, 16], strides = [1, 1]} : vector<160x16xf32> to vector<16x16xf32>
    %163 = arith.truncf %162 : vector<16x16xf32> to vector<16x16xbf16>
    %cst_39 = arith.constant dense<0.000000e+00> : vector<16x16xf32>
    %164 = tpu.matmul %27, %163, %cst_39 {dimension_numbers = #tpu.dot_dimension_numbers<[1], [0], [0], [1], [0, 0, 1, 1], [], []>} : vector<16x16xbf16>, vector<16x16xbf16>, vector<16x16xf32> -> vector<16x16xf32>
    %165 = vector.extract_strided_slice %62 {offsets = [48, 0], sizes = [16, 16], strides = [1, 1]} : vector<160x16xf32> to vector<16x16xf32>
    %166 = arith.truncf %165 : vector<16x16xf32> to vector<16x16xbf16>
    %cst_40 = arith.constant dense<0.000000e+00> : vector<16x16xf32>
    %167 = tpu.matmul %27, %166, %cst_40 {dimension_numbers = #tpu.dot_dimension_numbers<[1], [0], [0], [1], [0, 0, 1, 1], [], []>} : vector<16x16xbf16>, vector<16x16xbf16>, vector<16x16xf32> -> vector<16x16xf32>
    %168 = vector.extract_strided_slice %62 {offsets = [80, 0], sizes = [16, 16], strides = [1, 1]} : vector<160x16xf32> to vector<16x16xf32>
    %169 = arith.truncf %168 : vector<16x16xf32> to vector<16x16xbf16>
    %cst_41 = arith.constant dense<0.000000e+00> : vector<16x16xf32>
    %170 = tpu.matmul %27, %169, %cst_41 {dimension_numbers = #tpu.dot_dimension_numbers<[1], [0], [0], [1], [0, 0, 1, 1], [], []>} : vector<16x16xbf16>, vector<16x16xbf16>, vector<16x16xf32> -> vector<16x16xf32>
    %171 = vector.extract_strided_slice %62 {offsets = [112, 0], sizes = [16, 16], strides = [1, 1]} : vector<160x16xf32> to vector<16x16xf32>
    %172 = arith.truncf %171 : vector<16x16xf32> to vector<16x16xbf16>
    %cst_42 = arith.constant dense<0.000000e+00> : vector<16x16xf32>
    %173 = tpu.matmul %27, %172, %cst_42 {dimension_numbers = #tpu.dot_dimension_numbers<[1], [0], [0], [1], [0, 0, 1, 1], [], []>} : vector<16x16xbf16>, vector<16x16xbf16>, vector<16x16xf32> -> vector<16x16xf32>
    %174 = vector.extract_strided_slice %62 {offsets = [144, 0], sizes = [16, 16], strides = [1, 1]} : vector<160x16xf32> to vector<16x16xf32>
    %175 = arith.truncf %174 : vector<16x16xf32> to vector<16x16xbf16>
    %cst_43 = arith.constant dense<0.000000e+00> : vector<16x16xf32>
    %176 = tpu.matmul %27, %175, %cst_43 {dimension_numbers = #tpu.dot_dimension_numbers<[1], [0], [0], [1], [0, 0, 1, 1], [], []>} : vector<16x16xbf16>, vector<16x16xbf16>, vector<16x16xf32> -> vector<16x16xf32>
    %177 = arith.mulf %164, %164 : vector<16x16xf32>
    %178 = arith.mulf %167, %167 : vector<16x16xf32>
    %179 = arith.mulf %164, %167 : vector<16x16xf32>
    %180 = arith.subf %170, %177 : vector<16x16xf32>
    %181 = arith.subf %173, %178 : vector<16x16xf32>
    %182 = arith.subf %176, %179 : vector<16x16xf32>
    %cst_44 = arith.constant 2.000000e+00 : f32
    %183 = vector.broadcast %cst_44 : f32 to vector<16x16xf32>
    %184 = arith.mulf %183, %179 : vector<16x16xf32>
    %cst_45 = arith.constant 9.99999974E-5 : f32
    %185 = vector.broadcast %cst_45 : f32 to vector<16x16xf32>
    %186 = arith.addf %184, %185 : vector<16x16xf32>
    %cst_46 = arith.constant 2.000000e+00 : f32
    %187 = vector.broadcast %cst_46 : f32 to vector<16x16xf32>
    %188 = arith.mulf %187, %182 : vector<16x16xf32>
    %cst_47 = arith.constant 8.99999984E-4 : f32
    %189 = vector.broadcast %cst_47 : f32 to vector<16x16xf32>
    %190 = arith.addf %188, %189 : vector<16x16xf32>
    %191 = arith.mulf %186, %190 : vector<16x16xf32>
    %192 = arith.addf %177, %178 : vector<16x16xf32>
    %cst_48 = arith.constant 9.99999974E-5 : f32
    %193 = vector.broadcast %cst_48 : f32 to vector<16x16xf32>
    %194 = arith.addf %192, %193 : vector<16x16xf32>
    %195 = arith.addf %180, %181 : vector<16x16xf32>
    %cst_49 = arith.constant 8.99999984E-4 : f32
    %196 = vector.broadcast %cst_49 : f32 to vector<16x16xf32>
    %197 = arith.addf %195, %196 : vector<16x16xf32>
    %198 = arith.mulf %194, %197 : vector<16x16xf32>
    %199 = tpu.reciprocal %198 {approx = true} : vector<16x16xf32> -> vector<16x16xf32>
    %200 = arith.mulf %191, %199 : vector<16x16xf32>
    %201 = vector.shape_cast %200 : vector<16x16xf32> to vector<1x16x16xf32>
    %cst_50 = arith.constant dense<0.000000e+00> : vector<1xf32>
    %202 = vector.multi_reduction <add>, %201, %cst_50 [1, 2] : vector<1x16x16xf32> to vector<1xf32>
    %203 = vector.shape_cast %202 : vector<1xf32> to vector<1x1x1xf32>
    %204 = vector.extract %203[0, 0, 0] : f32 from vector<1x1x1xf32>
    %205 = vector.extract_strided_slice %18 {offsets = [1, 0, 0], sizes = [1, 16, 16], strides = [1, 1, 1]} : vector<2x16x16xf32> to vector<1x16x16xf32>
    %206 = vector.shape_cast %205 : vector<1x16x16xf32> to vector<16x16xf32>
    %207 = vector.shape_cast %206 : vector<16x16xf32> to vector<1x16x16xf32>
    %cst_51 = arith.constant dense<0.000000e+00> : vector<1xf32>
    %208 = vector.multi_reduction <add>, %207, %cst_51 [1, 2] : vector<1x16x16xf32> to vector<1xf32>
    %209 = vector.shape_cast %208 : vector<1xf32> to vector<1x1x1xf32>
    %210 = vector.extract %209[0, 0, 0] : f32 from vector<1x1x1xf32>
    %211 = vector.extract_strided_slice %19 {offsets = [1, 0, 0], sizes = [1, 16, 16], strides = [1, 1, 1]} : vector<2x16x16xf32> to vector<1x16x16xf32>
    %212 = vector.shape_cast %211 : vector<1x16x16xf32> to vector<16x16xf32>
    %213 = vector.shape_cast %212 : vector<16x16xf32> to vector<1x16x16xf32>
    %cst_52 = arith.constant dense<0.000000e+00> : vector<1xf32>
    %214 = vector.multi_reduction <add>, %213, %cst_52 [1, 2] : vector<1x16x16xf32> to vector<1xf32>
    %215 = vector.shape_cast %214 : vector<1xf32> to vector<1x1x1xf32>
    %216 = vector.extract %215[0, 0, 0] : f32 from vector<1x1x1xf32>
    %217 = vector.extract_strided_slice %1 {offsets = [1, 0, 0], sizes = [1, 16, 16], strides = [1, 1, 1]} : vector<2x16x16xf32> to vector<1x16x16xf32>
    %218 = vector.shape_cast %217 : vector<1x16x16xf32> to vector<16x16xf32>
    %219 = vector.shape_cast %218 : vector<16x16xf32> to vector<1x16x16xf32>
    %cst_53 = arith.constant dense<0.000000e+00> : vector<1xf32>
    %220 = vector.multi_reduction <add>, %219, %cst_53 [1, 2] : vector<1x16x16xf32> to vector<1xf32>
    %221 = vector.shape_cast %220 : vector<1xf32> to vector<1x1x1xf32>
    %222 = vector.extract %221[0, 0, 0] : f32 from vector<1x1x1xf32>
    %223 = vector.extract_strided_slice %3 {offsets = [1, 0, 0], sizes = [1, 16, 16], strides = [1, 1, 1]} : vector<2x16x16xf32> to vector<1x16x16xf32>
    %224 = vector.shape_cast %223 : vector<1x16x16xf32> to vector<16x16xf32>
    %225 = vector.shape_cast %224 : vector<16x16xf32> to vector<1x16x16xf32>
    %cst_54 = arith.constant dense<0.000000e+00> : vector<1xf32>
    %226 = vector.multi_reduction <add>, %225, %cst_54 [1, 2] : vector<1x16x16xf32> to vector<1xf32>
    %227 = vector.shape_cast %226 : vector<1xf32> to vector<1x1x1xf32>
    %228 = vector.extract %227[0, 0, 0] : f32 from vector<1x1x1xf32>
    %229 = vector.extract_strided_slice %26 {offsets = [1, 0, 0], sizes = [1, 16, 16], strides = [1, 1, 1]} : vector<2x16x16xf32> to vector<1x16x16xf32>
    %230 = vector.shape_cast %229 : vector<1x16x16xf32> to vector<16x16xf32>
    %231 = vector.shape_cast %230 : vector<16x16xf32> to vector<1x16x16xf32>
    %cst_55 = arith.constant dense<0.000000e+00> : vector<1xf32>
    %232 = vector.multi_reduction <add>, %231, %cst_55 [1, 2] : vector<1x16x16xf32> to vector<1xf32>
    %233 = vector.shape_cast %232 : vector<1xf32> to vector<1x1x1xf32>
    %234 = vector.extract %233[0, 0, 0] : f32 from vector<1x1x1xf32>
    %cst_56 = arith.constant 0.000000e+00 : f32
    %235 = vector.broadcast %cst_56 : f32 to vector<1x1x128xf32>
    %c0_i32_57 = arith.constant 0 : i32
    %236 = vector.broadcast %c0_i32_57 : i32 to vector<1x1x128xi32>
    %237 = arith.cmpi eq, %63, %236 : vector<1x1x128xi32>
    %238 = vector.broadcast %210 : f32 to vector<1x1x128xf32>
    %239 = arith.select %237, %238, %235 : vector<1x1x128xi1>, vector<1x1x128xf32>
    %c1_i32_58 = arith.constant 1 : i32
    %240 = vector.broadcast %c1_i32_58 : i32 to vector<1x1x128xi32>
    %241 = arith.cmpi eq, %63, %240 : vector<1x1x128xi32>
    %242 = vector.broadcast %204 : f32 to vector<1x1x128xf32>
    %243 = arith.select %241, %242, %239 : vector<1x1x128xi1>, vector<1x1x128xf32>
    %c2_i32_59 = arith.constant 2 : i32
    %244 = vector.broadcast %c2_i32_59 : i32 to vector<1x1x128xi32>
    %245 = arith.cmpi eq, %63, %244 : vector<1x1x128xi32>
    %246 = vector.broadcast %216 : f32 to vector<1x1x128xf32>
    %247 = arith.select %245, %246, %243 : vector<1x1x128xi1>, vector<1x1x128xf32>
    %c3_i32_60 = arith.constant 3 : i32
    %248 = vector.broadcast %c3_i32_60 : i32 to vector<1x1x128xi32>
    %249 = arith.cmpi eq, %63, %248 : vector<1x1x128xi32>
    %250 = vector.broadcast %222 : f32 to vector<1x1x128xf32>
    %251 = arith.select %249, %250, %247 : vector<1x1x128xi1>, vector<1x1x128xf32>
    %c4_i32_61 = arith.constant 4 : i32
    %252 = vector.broadcast %c4_i32_61 : i32 to vector<1x1x128xi32>
    %253 = arith.cmpi eq, %63, %252 : vector<1x1x128xi32>
    %254 = vector.broadcast %228 : f32 to vector<1x1x128xf32>
    %255 = arith.select %253, %254, %251 : vector<1x1x128xi1>, vector<1x1x128xf32>
    %c5_i32_62 = arith.constant 5 : i32
    %256 = vector.broadcast %c5_i32_62 : i32 to vector<1x1x128xi32>
    %257 = arith.cmpi eq, %63, %256 : vector<1x1x128xi32>
    %258 = vector.broadcast %234 : f32 to vector<1x1x128xf32>
    %259 = arith.select %257, %258, %255 : vector<1x1x128xi1>, vector<1x1x128xf32>
    %260 = tpu.concatenate %161, %259 in 0 : vector<1x1x128xf32>, vector<1x1x128xf32> -> vector<2x1x128xf32>
    %c0_63 = arith.constant 0 : index
    %c0_64 = arith.constant 0 : index
    %c0_65 = arith.constant 0 : index
    %261 = vector.load %arg7[%c0_63, %c0_64, %c0_65] : memref<2x1x128xf32, #tpu.memory_space<vmem>>, vector<2x1x128xf32>
    tpu.vector_store %arg7[%c0_63, %c0_64, %c0_65], %260 {strides = array<i32>} : memref<2x1x128xf32, #tpu.memory_space<vmem>>, vector<2x1x128xf32>,
    return
  }
  func.func @transform_0(%arg0: i32) -> (i32, i32, i32) {
    %c0_i32 = arith.constant 0 : i32
    %c0_i32_0 = arith.constant 0 : i32
    %c0_i32_1 = arith.constant 0 : i32
    return %arg0, %c0_i32, %c0_i32_0 : i32, i32, i32
  }
  func.func @transform_1(%arg0: i32) -> (i32, i32, i32) {
    %c0_i32 = arith.constant 0 : i32
    %c0_i32_0 = arith.constant 0 : i32
    %c0_i32_1 = arith.constant 0 : i32
    return %arg0, %c0_i32, %c0_i32_0 : i32, i32, i32
  }
  func.func @transform_2(%arg0: i32) -> (i32, i32, i32) {
    %c0_i32 = arith.constant 0 : i32
    %c0_i32_0 = arith.constant 0 : i32
    %c0_i32_1 = arith.constant 0 : i32
    return %arg0, %c0_i32, %c0_i32_0 : i32, i32, i32
  }
  func.func @transform_3(%arg0: i32) -> (i32, i32, i32) {
    %c0_i32 = arith.constant 0 : i32
    %c0_i32_0 = arith.constant 0 : i32
    %c0_i32_1 = arith.constant 0 : i32
    return %arg0, %c0_i32, %c0_i32_0 : i32, i32, i32
  }
  func.func @transform_4(%arg0: i32) -> (i32, i32) {
    %c0_i32 = arith.constant 0 : i32
    %c0_i32_0 = arith.constant 0 : i32
    %c0_i32_1 = arith.constant 0 : i32
    return %c0_i32, %c0_i32_0 : i32, i32
  }
  func.func @transform_5(%arg0: i32) -> (i32, i32) {
    %c0_i32 = arith.constant 0 : i32
    %c0_i32_0 = arith.constant 0 : i32
    %c0_i32_1 = arith.constant 0 : i32
    return %c0_i32, %c0_i32_0 : i32, i32
  }
  func.func @transform_6(%arg0: i32) -> (i32, i32, i32) {
    %c0_i32 = arith.constant 0 : i32
    %c0_i32_0 = arith.constant 0 : i32
    %c0_i32_1 = arith.constant 0 : i32
    return %arg0, %c0_i32, %c0_i32_0 : i32, i32, i32
  }
}

</mosaic_0001>

<bundles_post_ra>
// kernel: tpu_custom_call.1
= control target key start
LH: loop header
LB: loop body
LE: loop exit
PB: predicated region body
PF: predicated region fallthrough
CT: control target
= control target key end

     0   :  { %s2561_s0 = inlined_call_operand.hbm [shape: bf16[4,16,16], index: 0, kind: input, shape index: {}]   ;;  %s2562_s1 = inlined_call_operand.hbm [shape: bf16[4,16,16], index: 1, kind: input, shape index: {}]   ;;  %s2563_s2 = inlined_call_operand.hbm [shape: bf16[4,16,16], index: 2, kind: input, shape index: {}]   ;;  %s2564_s3 = inlined_call_operand.hbm [shape: f32[4,16,16], index: 3, kind: input, shape index: {}]   ;;  %s2565_s4 = inlined_call_operand.vmem [shape: bf16[16,16], index: 4, kind: input, shape index: {}]   ;;  %s2566_s5 = inlined_call_operand.vmem [shape: bf16[16,16], index: 5, kind: input, shape index: {}]   ;;  %s2567_s6 = inlined_call_operand.hbm [shape: f32[4,1,128], index: 6, kind: output, shape index: {}]  }
   0x1   :  { %2577 = sst [smem:[#allocation18_spill]] %s2561_s0 }
   0x2   :  { %2578 = sst [smem:[#allocation19_spill]] %s2562_s1 }
   0x3   :  { %11 = vsyncpa [#allocation3], 0 }
   0x4   :  { %13 = vsyncpa [#allocation3 + $0x1], 0 }
   0x5   :  { %14 = vsyncpa [#allocation6], 0 }
   0x6   :  { %16 = vsyncpa [#allocation6 + $0x1], 0 }
   0x7   :  { %17 = vsyncpa [#allocation9], 0 }
   0x8   :  { %19 = vsyncpa [#allocation9 + $0x1], 0 }
   0x9   :  { %20 = vsyncpa [#allocation4], 0 }
   0xa   :  { %22 = vsyncpa [#allocation4 + $0x1], 0  ;;  %s2050_s21 = smov 0   ;;  %s2052_s22 = smov 0  }
   0xb   :  { %s2054_s23 = smov 0   ;;  %s2056_s24 = smov 0  }
   0xc LB: > { %2579 = sst [smem:[#allocation15_spill]] %s1996_s23  ;;  %s2071_s25 = sadd.s32 4294967295, %s2000_s24   ;;  %s2000_s24 = sphi %s2056_s24, %s2598_s24   ;;  %s1996_s23 = sphi %s2054_s23, %s2600_s23   ;;  %s1992_s22 = sphi %s2052_s22, %s2602_s22   ;;  %s1988_s21 = sphi %s2050_s21, %s2601_s21  }
   0xd   : > { %s1492_s26 = sadd.s32 4294967294, %s2000_s24   ;;  %s2075_s27 = sadd.s32 1, %s2000_s24  }
   0xe   : > { %2580 = sst [smem:[#allocation16_spill]] %s2075_s27  ;;  %s35_s28 = sadd.s32 1, %s1996_s23 }
   0xf   : > { %s32_s29 = ssub.s32 %s2000_s24, %s2075_s27  ;;  %p42_p0 = scmp.ne.s32.totalorder %s1996_s23, %s1992_s22 }
  0x10   : > { %p33_p1 = scmp.eq.s32.totalorder %s32_s29, 0  ;;  %p43_p2 = scmp.eq.s32.totalorder %s2000_s24, 0 }
  0x11   : > { %p48_p3 = scmp.ne.s32.totalorder %s1992_s22, %s1988_s21  ;;  %p49_p4 = scmp.eq.s32.totalorder %s2071_s25, 0 }
  0x12   : > { %s2087_s30 = scalar_select %p33_p1, %s1996_s23, %s35_s28  }
  0x13   : > { %p44_p5 = por %p43_p2, %p42_p0  ;;  %p2089_p6 = por %p49_p4, %p48_p3 }
  0x14   : > { %2581 = sst [smem:[#allocation17_spill]] %s2087_s30  ;;  %p192_p7 = scmp.eq.s32.totalorder %s2071_s25, 1 }
  0x15   : > { %s2582_s7 = scalar_select %p2089_p6, 1, 0 }
  0x16   : > { %p198_p8 = scmp.eq.s32.totalorder %s1492_s26, 1  ;;  %p1730_p10 = scmp.lt.s32.totalorder %s2000_s24, 2 }
  0x17   : > { %p2096_p11 = por %p192_p7, %p42_p0  ;;  %s2105_s10 = sand.u32 1, %s1996_s23  }
  0x18   : > { %p2100_p12 = por %p198_p8, %p48_p3  ;;  %s2108_s11 = sshll.u32 %s2000_s24, 8 }
  0x19   : > { %s2583_s8 = scalar_select %p2096_p11, 1, 0 }
  0x1a   : > { %s2584_s9 = scalar_select %p2100_p12, 1, 0 }
  0x1b   : > { %s2111_s12 = sshll.u32 %s2105_s10, 4  ;;  %p2113_p13 = pnand %p1730_p10, %p44_p5 }
  0x1c   : > { %s246_s14 = sand.u32 1, %s2000_s24   ;;  %s2586_s1 = sld [smem:[#allocation19_spill]] }
  0x1d   : > { %s250_s18 = scalar_lea.vmem [#allocation5], %s2111_s12  ;;  %s2128_s20 = scalar_lea.sflag [#allocation6], %s246_s14 }
  0x1e   : > { %s258_s19 = sshll.u32 %s250_s18, 4  ;;  %p2134_p2 = pneg %p2113_p13  ;;  %s2125_s19 = int_to_ptr.vmem [resolvable:$true] %s258_s19 }
  0x22   : > { %s2122_s17 = scalar_lea.hbm %s2586_s1, %s2108_s11  ;;  %s1811_s16 = scalar_lea.hbm %s2586_s1, 512 }
  0x23   : > { %s1806_s26 = scalar_lea.hbm %s2122_s17, 256  ;;  %p1812_p5 = scmp.lt.u32.totalorder %s2122_s17, %s2586_s1 }
  0x24   : > { %p1807_p1 = scmp.ne.s32.totalorder %s2122_s17, %s1806_s26  ;;  %p1813_p7 = scmp.lt.u32.totalorder %s1811_s16, %s1806_s26 }
  0x25   : > { %p1815_p10 = scmp.lt.u32.totalorder %s1806_s26, %s2122_s17 }
  0x26   : > { %p1809_p3 = pnand %p2134_p2, %p1807_p1  ;;  %p1814_p8 = por %p1813_p7, %p1812_p5 }
  0x28   : > { %p1810_p4 = pneg %p1809_p3  ;;  %p1816_p9 = por %p1815_p10, %p1814_p8 }
  0x2a   : > { %p1817_p0 = pnand %p1816_p9, %p1810_p4 }
  0x2c   : > { %1820 = shalt.err (!%p1817_p0)
}
  0x2d   : > { %s1821_s14 = scalar_lea.vmem %s2125_s19, 256  ;;  %s2002_s29 = smov [#allocation5]  }
  0x2e   : > { %p1822_p1 = scmp.ne.s32.totalorder %s2125_s19, %s1821_s14  ;;  %s1826_s15 = sshll.u32 %s2002_s29, 4  ;;  %s1827_s15 = int_to_ptr.vmem [resolvable:$false] %s1826_s15 }
  0x2f   : > { %s1828_s30 = scalar_lea.vmem %s1827_s15, 512  ;;  %p1829_p11 = scmp.lt.s32.totalorder %s2125_s19, %s1827_s15 }
  0x30   : > { %p1824_p3 = pnand %p1822_p1, %p2134_p2  ;;  %p1830_p6 = scmp.lt.s32.totalorder %s1828_s30, %s1821_s14 }
  0x32   : > { %p1825_p12 = pneg %p1824_p3  ;;  %p1831_p5 = por %p1830_p6, %p1829_p11 }
  0x34   : > { %p1832_p7 = pnand %p1831_p5, %p1825_p12 }
  0x36   : > { %1835 = shalt.err (!%p1832_p7)
}
  0x37   : > { %s2570_s26 = smov 64   ;;  %s2572_s16 = smov 4  }
  0x38   : > { %1719 = dma.hbm_to_vmem [thread:$0]  (!%p2113_p13), %s2122_s17, 256, %s2125_s19, %s2128_s20, %s2570_s26, %s2570_s26, %s2572_s16  }
  0x39   : > { %p310_p6 = scmp.lt.s32.totalorder %s2000_s24, 3  ;;  %s2588_s0 = sld [smem:[#allocation18_spill]] }
  0x3a   : > { %p2589_p9 = scmp.ge.s32.totalorder %s2000_s24, 1  ;;  %s228_s30 = scalar_lea.vmem [#allocation2], %s2111_s12 }
  0x3b   : > { %s236_s1 = sshll.u32 %s228_s30, 4  ;;  %s225_s17 = scalar_lea.sflag [#allocation3], %s2105_s10  ;;  %s2175_s1 = int_to_ptr.vmem [resolvable:$true] %s236_s1 }
  0x3c   : > { %p2170_p11 = pnand %p2589_p9, %p310_p6 }
  0x3e   : > { %s2590_s15 = scalar_select %p2170_p11, 1, 0 }
  0x3f   : > { %s2166_s29 = scalar_lea.hbm %s2588_s0, %s2108_s11  ;;  %s1841_s26 = scalar_lea.hbm %s2588_s0, 512 }
  0x40   : > { %s1836_s19 = scalar_lea.hbm %s2166_s29, 256  ;;  %p1842_p8 = scmp.lt.u32.totalorder %s2166_s29, %s2588_s0 }
  0x41   : > { %p1837_p12 = scmp.ne.s32.totalorder %s2166_s29, %s1836_s19  ;;  %p1843_p10 = scmp.lt.u32.totalorder %s1841_s26, %s1836_s19 }
  0x42   : > { %p1845_p3 = scmp.lt.u32.totalorder %s1836_s19, %s2166_s29 }
  0x43   : > { %p1839_p0 = pnand %p1837_p12, %p2134_p2  ;;  %p1844_p1 = por %p1843_p10, %p1842_p8 }
  0x45   : > { %p1840_p4 = pneg %p1839_p0  ;;  %p1846_p5 = por %p1845_p3, %p1844_p1 }
  0x47   : > { %p1847_p7 = pnand %p1846_p5, %p1840_p4 }
  0x49   : > { %1850 = shalt.err (!%p1847_p7)
}
  0x4a   : > { %s1851_s30 = scalar_lea.vmem %s2175_s1, 256  ;;  %s2005_s18 = smov [#allocation2]  }
  0x4b   : > { %p1852_p6 = scmp.ne.s32.totalorder %s2175_s1, %s1851_s30  ;;  %s1856_s14 = sshll.u32 %s2005_s18, 4  ;;  %s1857_s14 = int_to_ptr.vmem [resolvable:$false] %s1856_s14 }
  0x4c   : > { %s1858_s23 = scalar_lea.vmem %s1857_s14, 512  ;;  %p1859_p0 = scmp.lt.s32.totalorder %s2175_s1, %s1857_s14 }
  0x4d   : > { %p1854_p9 = pnand %p1852_p6, %p2134_p2  ;;  %p1860_p11 = scmp.lt.s32.totalorder %s1858_s23, %s1851_s30 }
  0x4f   : > { %p1855_p12 = pneg %p1854_p9  ;;  %p1861_p8 = por %p1860_p11, %p1859_p0 }
  0x51   : > { %p1862_p10 = pnand %p1861_p8, %p1855_p12 }
  0x53   : > { %1865 = shalt.err (!%p1862_p10)
}
  0x54   : > { %s2591_s26 = smov 4   ;;  %s2592_s16 = smov 64  }
  0x55   : > { %1716 = dma.hbm_to_vmem [thread:$0]  (!%p2113_p13), %s2166_s29, 256, %s2175_s1, %s225_s17, %s2592_s16, %s2592_s16, %s2591_s26  }
  0x56   : > { %s2208_s30 = scalar_lea.hbm %s2563_s2, %s2108_s11  ;;  %s272_s14 = scalar_lea.vmem [#allocation7], %s2111_s12 }
  0x57   : > { %s280_s23 = sshll.u32 %s272_s14, 4  ;;  %s1866_s0 = scalar_lea.hbm %s2208_s30, 256  ;;  %s2211_s23 = int_to_ptr.vmem [resolvable:$true] %s280_s23 }
  0x58   : > { %p1867_p11 = scmp.ne.s32.totalorder %s2208_s30, %s1866_s0  ;;  %s1871_s29 = scalar_lea.hbm %s2563_s2, 512 }
  0x59   : > { %p1872_p3 = scmp.lt.u32.totalorder %s2208_s30, %s2563_s2  ;;  %p1873_p5 = scmp.lt.u32.totalorder %s1871_s29, %s1866_s0 }
  0x5a   : > { %p1869_p4 = pnand %p1867_p11, %p2134_p2  ;;  %p1875_p6 = scmp.lt.u32.totalorder %s1866_s0, %s2208_s30 }
  0x5b   : > { %p1874_p7 = por %p1873_p5, %p1872_p3 }
  0x5c   : > { %p1870_p1 = pneg %p1869_p4 }
  0x5d   : > { %p1876_p9 = por %p1875_p6, %p1874_p7 }
  0x5f   : > { %p1877_p12 = pnand %p1876_p9, %p1870_p1 }
  0x61   : > { %1880 = shalt.err (!%p1877_p12)
}
  0x62   : > { %s1881_s12 = scalar_lea.vmem %s2211_s23, 256  ;;  %s2006_s27 = smov [#allocation7]  }
  0x63   : > { %p1882_p0 = scmp.ne.s32.totalorder %s2211_s23, %s1881_s12  ;;  %s1886_s19 = sshll.u32 %s2006_s27, 4  ;;  %s1887_s19 = int_to_ptr.vmem [resolvable:$false] %s1886_s19 }
  0x64   : > { %s1888_s18 = scalar_lea.vmem %s1887_s19, 512  ;;  %p1889_p11 = scmp.lt.s32.totalorder %s2211_s23, %s1887_s19 }
  0x65   : > { %p1884_p8 = pnand %p1882_p0, %p2134_p2  ;;  %p1890_p4 = scmp.lt.s32.totalorder %s1888_s18, %s1881_s12 }
  0x67   : > { %p1885_p10 = pneg %p1884_p8  ;;  %p1891_p3 = por %p1890_p4, %p1889_p11 }
  0x69   : > { %p1892_p5 = pnand %p1891_p3, %p1885_p10 }
  0x6b   : > { %1895 = shalt.err (!%p1892_p5)
}
  0x6c   : > { %1722 = dma.hbm_to_vmem [thread:$0]  (!%p2113_p13), %s2208_s30, 256, %s2211_s23, %s2128_s20, %s2592_s16, %s2592_s16, %s2591_s26  }
  0x6d   : > { %s1507_s0 = sshll.u32 %s2105_s10, 5  ;;  %s1555_s14 = sshll.u32 %s2000_s24, 9 }
  0x6e   : > { %s2243_s17 = scalar_lea.hbm %s2564_s3, %s1555_s14  ;;  %s294_s11 = scalar_lea.vmem [#allocation8], %s1507_s0 }
  0x6f   : > { %s302_s12 = sshll.u32 %s294_s11, 4  ;;  %s291_s27 = scalar_lea.sflag [#allocation9], %s2105_s10  ;;  %s2245_s12 = int_to_ptr.vmem [resolvable:$true] %s302_s12 }
  0x70   : > { %s1896_s19 = scalar_lea.hbm %s2243_s17, 512  ;;  %s1901_s16 = scalar_lea.hbm %s2564_s3, 1024 }
  0x71   : > { %p1897_p1 = scmp.ne.s32.totalorder %s2243_s17, %s1896_s19  ;;  %p1902_p9 = scmp.lt.u32.totalorder %s2243_s17, %s2564_s3 }
  0x72   : > { %p1903_p12 = scmp.lt.u32.totalorder %s1901_s16, %s1896_s19  ;;  %p1905_p8 = scmp.lt.u32.totalorder %s1896_s19, %s2243_s17 }
  0x73   : > { %p1899_p7 = pnand %p1897_p1, %p2134_p2 }
  0x74   : > { %p1904_p0 = por %p1903_p12, %p1902_p9 }
  0x75   : > { %p1900_p6 = pneg %p1899_p7 }
  0x76   : > { %p1906_p10 = por %p1905_p8, %p1904_p0 }
  0x78   : > { %p1907_p11 = pnand %p1906_p10, %p1900_p6 }
  0x7a   : > { %1910 = shalt.err (!%p1907_p11)
}
  0x7b   : > { %s1911_s18 = scalar_lea.vmem %s2245_s12, 512  ;;  %s2007_s0 = smov [#allocation8]  }
  0x7c   : > { %p1912_p4 = scmp.ne.s32.totalorder %s2245_s12, %s1911_s18  ;;  %s1916_s14 = sshll.u32 %s2007_s0, 4  ;;  %s1917_s14 = int_to_ptr.vmem [resolvable:$false] %s1916_s14 }
  0x7d   : > { %s1918_s1 = scalar_lea.vmem %s1917_s14, 1024  ;;  %p1919_p1 = scmp.lt.s32.totalorder %s2245_s12, %s1917_s14 }
  0x7e   : > { %p1914_p3 = pnand %p1912_p4, %p2134_p2  ;;  %p1920_p7 = scmp.lt.s32.totalorder %s1918_s1, %s1911_s18 }
  0x80   : > { %p1915_p5 = pneg %p1914_p3  ;;  %p1921_p9 = por %p1920_p7, %p1919_p1 }
  0x82   : > { %p1922_p12 = pnand %p1921_p9, %p1915_p5 }
  0x84   : > { %1925 = shalt.err (!%p1922_p12)
}
  0x85   : > { %s2008_s29 = smov 128   ;;  %s2009_s11 = smov 8  }
  0x86   : > { %1725 = dma.hbm_to_vmem [thread:$0]  (!%p2113_p13), %s2243_s17, 512, %s2245_s12, %s291_s27, %s2008_s29, %s2008_s29, %s2009_s11  }
  0x87   : > { %p2593_p2 = scmp.ne.s32.totalorder %s2590_s15, 0 }
  0x88   : > { %s2274_s28 = sand.u32 (!%p2593_p2), 1, %s1992_s22   ;;  %p2594_p6 = scmp.ne.s32.totalorder (!%p2593_p2), %s2582_s7, 0 }
  0x89   : > { %314 = sbr.rel (%p2593_p2) target bundleno = 889 (0x379), region = 44  ;;  %s2277_s19 = sshll.u32 (!%p2593_p2), %s2274_s28, 4 }
  0x8a   : > { %s317_s20 = scalar_lea.sflag (!%p2593_p2), [#allocation3], %s2274_s28  ;;  %s320_s26 = scalar_lea.vmem (!%p2593_p2), [#allocation2], %s2277_s19 }
  0x90   : > { %1971 = dma.done.wait (%p2594_p6), %s317_s20, 256  }
  0x91   : > { %1973 = vsyncadd (%p2594_p6), %s317_s20, 4294967040  ;;  %s325_s10 = sand.u32 1, %s2071_s25   ;;  %s329_s15 = scalar_lea.vmem [#allocation5], %s2277_s19 }
  0x92   : > { %s326_s13 = scalar_lea.sflag [#allocation6], %s325_s10 }
  0x93   : > { %1975 = dma.done.wait (%p2594_p6), %s326_s13, 512  }
  0x94   : > { %1977 = vsyncadd (%p2594_p6), %s326_s13, 4294966784  ;;  %s1515_s17 = sshll.u32 %s2274_s28, 5  ;;  %s338_s12 = scalar_lea.vmem [#allocation7], %s2277_s19 }
  0x95   : > { %s344_s27 = scalar_lea.sflag [#allocation9], %s2274_s28  ;;  %s2294_s16 = scalar_lea.vmem [#allocation8], %s1515_s17 }
  0x96   : > { %1979 = dma.done.wait (%p2594_p6), %s344_s27, 512  }
  0x97   : > { %1981 = vsyncadd (%p2594_p6), %s344_s27, 4294966784  ;;  %v1772_v0 = vld [vmem:[%s2566_s5] sm:$0xff]   ;;  %vm517_vm0 = vcmask 130048   ;;  %v399_v2 = vld [vmem:[%s320_s26 + $0x8] sm:$0xff]   ;;  %v2010_v31 = vmov 0.0   ;;  %vm2011_vm1 = vmmov 0  }
  0x98   : > { %v397_v1 = vld [vmem:[%s320_s26] sm:$0xff]   ;;  %1597 = vmatprep.subr.bf16.mxu0 %v1772_v0  ;;  %v407_v6 = vld [vmem:[%s329_s15 + $0x8] sm:$0xff]   ;;  %v2314_v9 = vunpack.c.l.bf16 %v399_v2  ;;  %v2316_v10 = vunpack.c.h.bf16 %v399_v2  ;;  %1619 = vmatprep.subr.bf16.mxu1 %v2010_v31  ;;  %s1516_s11 = sshll.u32 %s2274_s28, 1  ;;  %s1556_s27 = sshll.u32 %s2071_s25, 5 }
  0x99   : > { %v405_v3 = vld [vmem:[%s329_s15] sm:$0xff]   ;;  %1598 = vmatpush3.bf16.msra.mxu0 %v1772_v0  ;;  %v2303_v4 = vunpack.c.l.bf16 %v397_v1  ;;  %v2305_v5 = vunpack.c.h.bf16 %v397_v1  ;;  %1599 = vmatprep.mubr.msk.bf16.mxu0 %vm517_vm0, %v397_v1  ;;  %v2332_v18 = vunpack.c.l.bf16 %v407_v6  ;;  %v2334_v19 = vunpack.c.h.bf16 %v407_v6  ;;  %s390_s26 = scalar_lea.vmem [#allocation10], %s1516_s11  ;;  %s2515_s7 = scalar_lea.hbm %s2567_s6, %s1556_s27 }
  0x9a   : > { %v2318_v11 = vunpack.c.l.bf16 %v405_v3  ;;  %v2320_v12 = vunpack.c.h.bf16 %v405_v3  ;;  %v495_v14 = vmul.f32 %v2314_v9, %v2314_v9  ;;  %v496_v15 = vmul.f32 %v2316_v10, %v2316_v10  ;;  %1649 = vmatprep.subr.bf16.mxu0 %v2010_v31  ;;  %1621 = vmatprep.mubr.msk.bf16.mxu1 %vm2011_vm1, %v2010_v31  ;;  %v1777_v38 = vld [vmem:[%s2565_s4] sm:$0xff]   ;;  %s1353_s15 = sshll.u32 %s390_s26, 4  ;;  %s1340_s18 = scalar_lea.sflag [#allocation4], %s2274_s28  ;;  %s2508_s15 = int_to_ptr.vmem [resolvable:$true] %s1353_s15 }
  0x9b   : > { %v493_v7 = vmul.f32 %v2303_v4, %v2303_v4  ;;  %v494_v8 = vmul.f32 %v2305_v5, %v2305_v5  ;;  %v499_v22 = vmul.f32 %v2332_v18, %v2332_v18  ;;  %v500_v23 = vmul.f32 %v2334_v19, %v2334_v19  ;;  %p2595_p0 = scmp.ne.s32.totalorder %s2583_s8, 0 }
  0x9c   : > { %1600 = vmatmul.mubr.msk.bf16.vlgmr.msra.gmra.mrb[0].mxu0 %vm517_vm0, %v399_v2  ;;  %v497_v16 = vmul.f32 %v2318_v11, %v2318_v11  ;;  %v498_v17 = vmul.f32 %v2320_v12, %v2320_v12  ;;  %v506_v20 = vpack.c.bf16 %v496_v15, %v495_v14  ;;  %v2344_v24 = vmul.f32 %v2318_v11, %v2303_v4 }
  0x9d   : > { %1603 = vmatprep.mubr.msk.bf16.mxu0 %vm517_vm0, %v405_v3  ;;  %v505_v13 = vpack.c.bf16 %v494_v8, %v493_v7  ;;  %v2348_v25 = vmul.f32 %v2320_v12, %v2305_v5  ;;  %v508_v26 = vpack.c.bf16 %v500_v23, %v499_v22  ;;  %v2355_v28 = vmul.f32 %v2332_v18, %v2314_v9 }
  0x9e   : > { %v507_v21 = vpack.c.bf16 %v498_v17, %v497_v16  ;;  %v2359_v29 = vmul.f32 %v2334_v19, %v2316_v10  ;;  %v433_v63 = vsub.f32 1.0, %v2303_v4  ;;  %v434_v0 = vsub.f32 1.0, %v2305_v5 }
  0x9f   : > { %v509_v27 = vpack.c.bf16 %v2348_v25, %v2344_v24  ;;  %1782 = vlog2.f32 %v2303_v4  ;;  %v966_v14 = vsel %vm517_vm0, %v2320_v12, 0.0  ;;  %v430_v22 = vsub.f32 1.0, %v2320_v12 }
  0xa0   : > { %v510_v30 = vpack.c.bf16 %v2359_v29, %v2355_v28  ;;  %1784 = vlog2.f32 %v2305_v5 }
  0xa1   : > { %1786 = vlog2.f32 %v433_v63 }
  0xa2   : > { %1788 = vlog2.f32 %v434_v0 }
  0xa3   : > { %1790 = vlog2.f32 %v2314_v9 }
  0xa4   : > { %1604 = vmatmul.mubr.msk.bf16.gmra.mrb[4].mxu0 %vm517_vm0, %v407_v6  ;;  %1792 = vlog2.f32 %v2316_v10 }
  0xa5   : > { %1607 = vmatprep.mubr.msk.bf16.mxu0 %vm517_vm0, %v505_v13  ;;  %v965_v13 = vsel %vm517_vm0, %v2318_v11, 0.0 }
  0xa6   : > { %v967_v16 = vadd.f32 %v966_v14, %v965_v13 }
  0xa8   : > { %968 = vadd.xlane.f32.xlu0 %v967_v16 }
  0xa9   : > { %v1783_v1 = vpop.eup %1782 }
  0xaa   : > { %v1785_v2 = vpop.eup %1784  ;;  %v414_v3 = vmul.f32 0.6931472, %v1783_v1 }
  0xab   : > { %v1787_v6 = vpop.eup %1786  ;;  %v416_v7 = vmul.f32 0.6931472, %v1785_v2 }
  0xac   : > { %1608 = vmatmul.mubr.msk.bf16.gmra.mrb[8].mxu0 %vm517_vm0, %v506_v20  ;;  %v1789_v8 = vpop.eup %1788  ;;  %v421_v15 = vmax.f32 %v414_v3, -100.0  ;;  %v429_v20 = vsub.f32 1.0, %v2318_v11  ;;  %v432_v3 = vsub.f32 1.0, %v2334_v19 }
  0xad   : > { %1611 = vmatprep.mubr.msk.bf16.mxu0 %vm517_vm0, %v507_v21  ;;  %v422_v17 = vmax.f32 %v416_v7, -100.0  ;;  %v438_v21 = vmul.f32 0.6931472, %v1787_v6  ;;  %v440_v23 = vmul.f32 0.6931472, %v1789_v8 }
  0xb4   : > { %1612 = vmatmul.mubr.msk.bf16.gmra.mrb[12].mxu0 %vm517_vm0, %v508_v26  ;;  %v425_v26 = vmul.f32 %v421_v15, %v2318_v11 }
  0xb5   : > { %1615 = vmatprep.mubr.msk.bf16.mxu0 %vm517_vm0, %v509_v27  ;;  %v426_v27 = vmul.f32 %v422_v17, %v2320_v12 }
  0xbc   : > { %1616 = vmatmul.mubr.msk.bf16.gmra.mrb[16].mxu0 %vm517_vm0, %v510_v30  ;;  %v445_v30 = vmax.f32 %v438_v21, -100.0 }
  0xbd   : > { %1651 = vmatprep.mubr.msk.bf16.mxu0 %vm2011_vm1, %v2010_v31 }
 0x16f   : > { %v1601_v32 = vpop.f32.mrb[0].mxu0 }
 0x170   : > { %v582_v33 = vpop.f32.mrb[1].mxu0 }
 0x171   : > { %v1602_v34 = vpop.f32.mrb[2].mxu0 }
 0x172   : > { %v1007_v35 = vpack.c.bf16 %v1602_v34, %v1601_v32  ;;  %v585_v36 = vpop.f32.mrb[3].mxu0  ;;  %v1278_v32 = vsel %vm517_vm0, %v2359_v29, 0.0  ;;  %v435_v34 = vsub.f32 1.0, %v2314_v9 }
 0x173   : > { %v663_v37 = vpack.c.bf16 %v585_v36, %v582_v33  ;;  %v446_v33 = vmax.f32 %v440_v23, -100.0  ;;  %v449_v36 = vmul.f32 %v445_v30, %v429_v20  ;;  %v476_v30 = vld [vmem:[%s2294_s16 + $0x18] sm:$0xff] }
 0x174   : > { %1650 = vmatpush3.bf16.msra.mxu0 %v1007_v35  ;;  %1794 = vlog2.f32 %v435_v34  ;;  %v480_v34 = vmul.f32 0.003921569, %v476_v30 }
 0x175   : > { %1620 = vmatpush3.bf16.msra.mxu1 %v663_v37  ;;  %1661 = vmatprep.subr.bf16.mxu0 %v2010_v31  ;;  %v436_v37 = vsub.f32 1.0, %v2316_v10  ;;  %v450_v11 = vmul.f32 %v446_v33, %v430_v22  ;;  %v453_v12 = vadd.f32 %v449_v36, %v425_v26  ;;  %v1565_v26 = vld [vmem:[%s338_s12 + $0x8] sm:$0xff]  }
 0x176   : > { %1625 = vmatprep.subr.bf16.mxu1 %v2010_v31 }
 0x177   : > { %v1605_v39 = vpop.f32.mrb[4].mxu0  ;;  %1652 = vmatmul.mubr.msk.bf16.vlgmr.msra.gmra.mrb[20].mxu0 %vm517_vm0, %v1777_v38  ;;  %v457_v29 = vsub.f32 0.0, %v453_v12  ;;  %1796 = vlog2.f32 %v436_v37  ;;  %v1289_v37 = vsel %vm517_vm0, %v2314_v9, 0.0 }
 0x178   : > { %v598_v40 = vpop.f32.mrb[5].mxu0  ;;  %1622 = vmatmul.mubr.msk.bf16.vlgmr.msra.gmra.mrb[0].mxu1 %vm517_vm0, %v1777_v38  ;;  %1663 = vmatprep.mubr.msk.bf16.mxu0 %vm2011_vm1, %v2010_v31 }
 0x179   : > { %v1606_v41 = vpop.f32.mrb[6].mxu0  ;;  %1627 = vmatprep.mubr.msk.bf16.mxu1 %vm2011_vm1, %v2010_v31 }
 0x17a   : > { %v1049_v42 = vpack.c.bf16 %v1606_v41, %v1605_v39  ;;  %v601_v43 = vpop.f32.mrb[7].mxu0  ;;  %v954_v39 = vsel %vm517_vm0, %v2305_v5, 0.0  ;;  %v941_v5 = vsel %vm517_vm0, %v2344_v24, 0.0 }
 0x17b   : > { %v713_v44 = vpack.c.bf16 %v601_v43, %v598_v40  ;;  %v473_v43 = vld [vmem:[%s2294_s16] sm:$0xff] }
 0x17d   : > { %1626 = vmatpush3.bf16.msra.mxu1 %v713_v44  ;;  %v474_v44 = vld [vmem:[%s2294_s16 + $0x8] sm:$0xff] }
 0x17e   : > { %1631 = vmatprep.subr.bf16.mxu1 %v2010_v31 }
 0x17f   : > { %v1609_v45 = vpop.f32.mrb[8].mxu0 }
 0x180   : > { %v614_v46 = vpop.f32.mrb[9].mxu0  ;;  %1628 = vmatmul.mubr.msk.bf16.vlgmr.msra.gmra.mrb[4].mxu1 %vm517_vm0, %v1777_v38 }
 0x181   : > { %v1610_v47 = vpop.f32.mrb[10].mxu0  ;;  %1633 = vmatprep.mubr.msk.bf16.mxu1 %vm2011_vm1, %v2010_v31 }
 0x182   : > { %v1091_v48 = vpack.c.bf16 %v1610_v47, %v1609_v45  ;;  %v617_v49 = vpop.f32.mrb[11].mxu0  ;;  %v929_v45 = vsel %vm517_vm0, %v457_v29, 0.0 }
 0x183   : > { %v755_v50 = vpack.c.bf16 %v617_v49, %v614_v46 }
 0x184   : > { %1662 = vmatpush3.bf16.msra.mxu0 %v1091_v48  ;;  %v477_v48 = vmul.f32 0.003921569, %v473_v43 }
 0x185   : > { %1632 = vmatpush3.bf16.msra.mxu1 %v755_v50  ;;  %1673 = vmatprep.subr.bf16.mxu0 %v2010_v31  ;;  %v478_v50 = vmul.f32 0.003921569, %v474_v44 }
 0x186   : > { %1637 = vmatprep.subr.bf16.mxu1 %v2010_v31 }
 0x187   : > { %v1613_v51 = vpop.f32.mrb[12].mxu0  ;;  %1664 = vmatmul.mubr.msk.bf16.vlgmr.msra.gmra.mrb[24].mxu0 %vm517_vm0, %v1777_v38 }
 0x188   : > { %v630_v52 = vpop.f32.mrb[13].mxu0  ;;  %1634 = vmatmul.mubr.msk.bf16.vlgmr.msra.gmra.mrb[8].mxu1 %vm517_vm0, %v1777_v38  ;;  %1675 = vmatprep.mubr.msk.bf16.mxu0 %vm2011_vm1, %v2010_v31 }
 0x189   : > { %v1614_v53 = vpop.f32.mrb[14].mxu0  ;;  %1639 = vmatprep.mubr.msk.bf16.mxu1 %vm2011_vm1, %v2010_v31 }
 0x18a   : > { %v1133_v54 = vpack.c.bf16 %v1614_v53, %v1613_v51  ;;  %v633_v55 = vpop.f32.mrb[15].mxu0  ;;  %v942_v51 = vsel %vm517_vm0, %v2348_v25, 0.0  ;;  %v431_v25 = vsub.f32 1.0, %v2332_v18 }
 0x18b   : > { %v797_v56 = vpack.c.bf16 %v633_v55, %v630_v52  ;;  %v943_v53 = vadd.f32 %v942_v51, %v941_v5 }
 0x18d   : > { %1638 = vmatpush3.bf16.msra.mxu1 %v797_v56  ;;  %v1791_v56 = vpop.eup %1790 }
 0x18e   : > { %1643 = vmatprep.subr.bf16.mxu1 %v2010_v31 }
 0x18f   : > { %v1617_v57 = vpop.f32.mrb[16].mxu0 }
 0x190   : > { %v646_v58 = vpop.f32.mrb[17].mxu0  ;;  %1640 = vmatmul.mubr.msk.bf16.vlgmr.msra.gmra.mrb[12].mxu1 %vm517_vm0, %v1777_v38 }
 0x191   : > { %v1618_v59 = vpop.f32.mrb[18].mxu0  ;;  %1645 = vmatprep.mubr.msk.bf16.mxu1 %vm2011_vm1, %v2010_v31 }
 0x192   : > { %v1175_v60 = vpack.c.bf16 %v1618_v59, %v1617_v57  ;;  %v649_v61 = vpop.f32.mrb[19].mxu0 }
 0x193   : > { %v839_v62 = vpack.c.bf16 %v649_v61, %v646_v58  ;;  %v1793_v58 = vpop.eup %1792 }
 0x194   : > { %1674 = vmatpush3.bf16.msra.mxu0 %v1175_v60  ;;  %v418_v60 = vmul.f32 0.6931472, %v1791_v56  ;;  %v1795_v61 = vpop.eup %1794  ;;  %v420_v63 = vmul.f32 0.6931472, %v1793_v58 }
 0x195   : > { %1644 = vmatpush3.bf16.msra.mxu1 %v839_v62  ;;  %v1797_v24 = vpop.eup %1796  ;;  %v442_v6 = vmul.f32 0.6931472, %v1795_v61 }
 0x196   : > { %1655 = vmatprep.subr.bf16.mxu1 %v2010_v31  ;;  %v423_v1 = vmax.f32 %v418_v60, -100.0  ;;  %v424_v2 = vmax.f32 %v420_v63, -100.0  ;;  %v444_v7 = vmul.f32 0.6931472, %v1797_v24 }
 0x197   : > { %1676 = vmatmul.mubr.msk.bf16.vlgmr.msra.gmra.mrb[28].mxu0 %vm517_vm0, %v1777_v38  ;;  %v447_v14 = vmax.f32 %v442_v6, -100.0 }
 0x198   : > { %1646 = vmatmul.mubr.msk.bf16.vlgmr.msra.gmra.mrb[16].mxu1 %vm517_vm0, %v1777_v38  ;;  %v427_v8 = vmul.f32 %v423_v1, %v2332_v18  ;;  %v428_v13 = vmul.f32 %v424_v2, %v2334_v19  ;;  %v448_v15 = vmax.f32 %v444_v7, -100.0 }
 0x199   : > { %1656 = vmatpush3.bf16.msra.mxu1 %v1049_v42  ;;  %1657 = vmatprep.mubr.msk.bf16.mxu1 %vm2011_vm1, %v2010_v31  ;;  %v1558_v42 = vld [vmem:[%s338_s12] sm:$0xff]   ;;  %v451_v16 = vmul.f32 %v447_v14, %v431_v25 }
 0x19a   : > { %1667 = vmatprep.subr.bf16.mxu1 %v2010_v31  ;;  %v1559_v46 = vunpack.c.l.bf16 %v1558_v42  ;;  %v1560_v47 = vunpack.c.h.bf16 %v1558_v42  ;;  %v452_v17 = vmul.f32 %v448_v15, %v432_v3 }
 0x19b   : > { %v455_v20 = vadd.f32 %v451_v16, %v427_v8 }
 0x19c   : > { %v481_v52 = vsub.f32 %v1559_v46, %v477_v48  ;;  %v456_v21 = vadd.f32 %v452_v17, %v428_v13 }
 0x19d   : > { %v459_v22 = vsub.f32 0.0, %v455_v20 }
 0x19e   : > { %v485_v55 = vmul.f32 %v481_v52, %v481_v52  ;;  %v460_v23 = vsub.f32 0.0, %v456_v21 }
 0x1a0   : > { %1658 = vmatmul.mubr.msk.bf16.vlgmr.msra.gmra.mrb[20].mxu1 %vm517_vm0, %v1777_v38  ;;  %v977_v59 = vsel %vm517_vm0, %v485_v55, 0.0  ;;  %v1266_v36 = vsel %vm517_vm0, %v460_v23, 0.0 }
 0x1a1   : > { %1668 = vmatpush3.bf16.msra.mxu1 %v1133_v54  ;;  %1669 = vmatprep.mubr.msk.bf16.mxu1 %vm2011_vm1, %v2010_v31  ;;  %v1277_v31 = vsel %vm517_vm0, %v2355_v28, 0.0  ;;  %v454_v28 = vadd.f32 %v450_v11, %v426_v27  ;;  %v482_v54 = vsub.f32 %v1560_v47, %v478_v50  ;;  %v475_v27 = vld [vmem:[%s2294_s16 + $0x10] sm:$0xff]  ;;  %v1290_v11 = vsel %vm517_vm0, %v2316_v10, 0.0 }
 0x1a2   : > { %v1279_v35 = vadd.f32 %v1278_v32, %v1277_v31  ;;  %v1563_v31 = vunpack.c.l.bf16 %v1565_v26  ;;  %v1564_v32 = vunpack.c.h.bf16 %v1565_v26  ;;  %v479_v33 = vmul.f32 0.003921569, %v475_v27 }
 0x1a3   : > { %v458_v40 = vsub.f32 0.0, %v454_v28  ;;  %v486_v57 = vmul.f32 %v482_v54, %v482_v54 }
 0x1a4   : > { %1280 = vadd.xlane.f32.xlu0 %v1279_v35  ;;  %v1265_v35 = vsel %vm517_vm0, %v459_v22, 0.0  ;;  %v483_v28 = vsub.f32 %v1563_v31, %v479_v33  ;;  %v484_v29 = vsub.f32 %v1564_v32, %v480_v34 }
 0x1a5   : > { %v930_v49 = vsel %vm517_vm0, %v458_v40, 0.0  ;;  %v978_v62 = vsel %vm517_vm0, %v486_v57, 0.0  ;;  %v1267_v12 = vadd.f32 %v1266_v36, %v1265_v35 }
 0x1a6   : > { %v979_v0 = vadd.f32 %v978_v62, %v977_v59  ;;  %v488_v40 = vmul.f32 %v484_v29, %v484_v29 }
 0x1a8   : > { %1670 = vmatmul.mubr.msk.bf16.vlgmr.msra.gmra.mrb[24].mxu1 %vm517_vm0, %v1777_v38  ;;  %v953_v38 = vsel %vm517_vm0, %v2303_v4, 0.0  ;;  %v931_v4 = vadd.f32 %v930_v49, %v929_v45  ;;  %v1314_v42 = vsel %vm517_vm0, %v488_v40, 0.0 }
 0x1a9   : > { %v955_v41 = vadd.f32 %v954_v39, %v953_v38  ;;  %v1291_v38 = vadd.f32 %v1290_v11, %v1289_v37  ;;  %v487_v39 = vmul.f32 %v483_v28, %v483_v28 }
 0x1aa   : > { %932 = vadd.xlane.f32.xlu0 %v931_v4 }
 0x1ab   : > { %956 = vadd.xlane.f32.xlu1 %v955_v41  ;;  %v1313_v41 = vsel %vm517_vm0, %v487_v39, 0.0 }
 0x1ac   : > { %v1315_v43 = vadd.f32 %v1314_v42, %v1313_v41 }
 0x1af   : > { %944 = vadd.xlane.f32.xlu1 %v943_v53 }
 0x1b3   : > { %980 = vadd.xlane.f32.xlu1 %v979_v0 }
 0x1b7   : > { %1268 = vadd.xlane.f32.xlu1 %v1267_v12 }
 0x1bb   : > { %1292 = vadd.xlane.f32.xlu1 %v1291_v38 }
 0x1bf   : > { %1316 = vadd.xlane.f32.xlu1 %v1315_v43 }
 0x24a   : > { %v2460_v44 = vpop.f32.mrb[20].mxu0 }
 0x24b   : > { %v706_v9 = vpop.f32.mrb[0].mxu1  ;;  %v1653_v45 = vpop.f32.mrb[21].mxu0  ;;  %v2466_v59 = vmul.f32 %v2460_v44, %v2460_v44 }
 0x24c   : > { %v1623_v46 = vpop.f32.mrb[1].mxu1  ;;  %v2462_v10 = vpop.f32.mrb[22].mxu0  ;;  %v881_v4 = vmul.f32 %v706_v9, %v706_v9 }
 0x24d   : > { %v709_v47 = vpop.f32.mrb[2].mxu1  ;;  %v1654_v48 = vpop.f32.mrb[23].mxu0  ;;  %v2470_v61 = vmul.f32 %v2462_v10, %v2462_v10 }
 0x24e   : > { %v1624_v49 = vpop.f32.mrb[3].mxu1  ;;  %v882_v54 = vmul.f32 %v709_v47, %v709_v47 }
 0x253   : > { %v748_v50 = vpop.f32.mrb[4].mxu1 }
 0x254   : > { %v883_v5 = vmul.f32 %v748_v50, %v748_v50  ;;  %v885_v51 = vmul.f32 %v748_v50, %v706_v9  ;;  %v1629_v52 = vpop.f32.mrb[5].mxu1 }
 0x255   : > { %v751_v53 = vpop.f32.mrb[6].mxu1 }
 0x256   : > { %v903_v55 = vadd.f32 %v883_v5, %v881_v4  ;;  %v884_v56 = vmul.f32 %v751_v53, %v751_v53  ;;  %v886_v57 = vmul.f32 %v751_v53, %v709_v47  ;;  %v1630_v58 = vpop.f32.mrb[7].mxu1  ;;  %v893_v36 = vmul.f32 2.0, %v885_v51 }
 0x258   : > { %v904_v60 = vadd.f32 %v884_v56, %v882_v54  ;;  %v905_v23 = vadd.f32 0.0001, %v903_v55  ;;  %v894_v39 = vmul.f32 2.0, %v886_v57  ;;  %v895_v43 = vadd.f32 0.0001, %v893_v36 }
 0x25a   : > { %v2472_v62 = vpop.f32.mrb[24].mxu0  ;;  %v906_v30 = vadd.f32 0.0001, %v904_v60  ;;  %v896_v46 = vadd.f32 0.0001, %v894_v39 }
 0x25b   : > { %v790_v63 = vpop.f32.mrb[8].mxu1  ;;  %v1223_v24 = vsub.f32 %v2472_v62, %v2466_v59  ;;  %v1665_v0 = vpop.f32.mrb[25].mxu0 }
 0x25c   : > { %v887_v1 = vsub.f32 %v790_v63, %v881_v4  ;;  %v1635_v25 = vpop.f32.mrb[9].mxu1  ;;  %v2476_v2 = vpop.f32.mrb[26].mxu0 }
 0x25d   : > { %v793_v3 = vpop.f32.mrb[10].mxu1  ;;  %v1224_v6 = vsub.f32 %v2476_v2, %v2470_v61  ;;  %v1666_v7 = vpop.f32.mrb[27].mxu0 }
 0x25e   : > { %v888_v8 = vsub.f32 %v793_v3, %v882_v54  ;;  %v1636_v13 = vpop.f32.mrb[11].mxu1 }
 0x263   : > { %v832_v14 = vpop.f32.mrb[12].mxu1 }
 0x264   : > { %v889_v15 = vsub.f32 %v832_v14, %v883_v5  ;;  %v1641_v16 = vpop.f32.mrb[13].mxu1 }
 0x265   : > { %v835_v17 = vpop.f32.mrb[14].mxu1 }
 0x266   : > { %v907_v20 = vadd.f32 %v889_v15, %v887_v1  ;;  %v890_v21 = vsub.f32 %v835_v17, %v884_v56  ;;  %v1642_v22 = vpop.f32.mrb[15].mxu1 }
 0x268   : > { %v909_v26 = vadd.f32 0.0009, %v907_v20  ;;  %v908_v27 = vadd.f32 %v890_v21, %v888_v8 }
 0x26a   : > { %v911_v31 = vmul.f32 %v909_v26, %v905_v23  ;;  %v910_v32 = vadd.f32 0.0009, %v908_v27  ;;  %v1210_v33 = vpop.f32.mrb[28].mxu0 }
 0x26b   : > { %v874_v34 = vpop.f32.mrb[16].mxu1  ;;  %v1677_v35 = vpop.f32.mrb[29].mxu0 }
 0x26c   : > { %1798 = vrcp.f32 %v911_v31  ;;  %v912_v37 = vmul.f32 %v910_v32, %v906_v30  ;;  %v891_v11 = vsub.f32 %v874_v34, %v885_v51  ;;  %v1647_v12 = vpop.f32.mrb[17].mxu1  ;;  %v1213_v28 = vpop.f32.mrb[30].mxu0 }
 0x26d   : > { %v877_v29 = vpop.f32.mrb[18].mxu1  ;;  %v1678_v38 = vpop.f32.mrb[31].mxu0 }
 0x26e   : > { %1800 = vrcp.f32 %v912_v37  ;;  %v897_v40 = vmul.f32 2.0, %v891_v11  ;;  %v892_v41 = vsub.f32 %v877_v29, %v886_v57  ;;  %v1648_v42 = vpop.f32.mrb[19].mxu1 }
 0x26f   : > { %v957_v42 = vpop.xlane.xlu1 %956 }
 0x270   : > { %v899_v9 = vadd.f32 0.0009, %v897_v40  ;;  %v898_v45 = vmul.f32 2.0, %v892_v41  ;;  %v1301_v40 = vsel %vm517_vm0, %v2332_v18, 0.0  ;;  %v969_v41 = vpop.xlane.xlu0 %968 }
 0x272   : > { %v901_v47 = vmul.f32 %v899_v9, %v895_v43  ;;  %v900_v48 = vadd.f32 0.0009, %v898_v45 }
 0x273   : > { %v1084_v49 = vpop.f32.mrb[20].mxu1  ;;  %v945_v9 = vpop.xlane.xlu1 %944 }
 0x274   : > { %v902_v50 = vmul.f32 %v900_v48, %v896_v46  ;;  %v1219_v4 = vmul.f32 %v1084_v49, %v1084_v49  ;;  %v1221_v5 = vmul.f32 %v1084_v49, %v2460_v44  ;;  %v1659_v51 = vpop.f32.mrb[21].mxu1  ;;  %v1281_v43 = vpop.xlane.xlu0 %1280  ;;  %v958_v49 = vrot.slane %v957_v42, 4 }
 0x275   : > { %v1087_v52 = vpop.f32.mrb[22].mxu1 }
 0x276   : > { %v1799_v53 = vpop.eup %1798  ;;  %v1229_v54 = vmul.f32 2.0, %v1221_v5  ;;  %v1239_v55 = vadd.f32 %v1219_v4, %v2466_v59  ;;  %v1220_v56 = vmul.f32 %v1087_v52, %v1087_v52  ;;  %v1222_v57 = vmul.f32 %v1087_v52, %v2462_v10  ;;  %v1660_v58 = vpop.f32.mrb[23].mxu1 }
 0x277   : > { %v1227_v60 = vsub.f32 %v1210_v33, %v1221_v5  ;;  %v915_v63 = vmul.f32 %v1799_v53, %v901_v47  ;;  %v946_v47 = vrot.slane %v945_v9, 4  ;;  %v981_v48 = vpop.xlane.xlu1 %980  ;;  %v959_v51 = vadd.f32 %v958_v49, %v957_v42 }
 0x278   : > { %v1801_v0 = vpop.eup %1800  ;;  %v1240_v1 = vadd.f32 %v1220_v56, %v2470_v61  ;;  %v1230_v25 = vmul.f32 2.0, %v1222_v57  ;;  %v1228_v7 = vsub.f32 %v1213_v28, %v1222_v57  ;;  %v1231_v44 = vadd.f32 0.0001, %v1229_v54  ;;  %v933_v45 = vpop.xlane.xlu0 %932 }
 0x279   : > { %v1233_v3 = vmul.f32 2.0, %v1227_v60  ;;  %v916_v8 = vmul.f32 %v1801_v0, %v902_v50  ;;  %v917_v16 = vsel %vm517_vm0, %v915_v63, 0.0  ;;  %v1241_v34 = vadd.f32 0.0001, %v1239_v55 }
 0x27a   : > { %v1234_v14 = vmul.f32 2.0, %v1228_v7  ;;  %v1232_v22 = vadd.f32 0.0001, %v1230_v25  ;;  %v1242_v37 = vadd.f32 0.0001, %v1240_v1  ;;  %v1302_v61 = vsel %vm517_vm0, %v2334_v19, 0.0 }
 0x27b   : > { %v1235_v13 = vadd.f32 0.0009, %v1233_v3  ;;  %v1168_v15 = vpop.f32.mrb[24].mxu1  ;;  %v918_v17 = vsel %vm517_vm0, %v916_v8, 0.0  ;;  %v934_v46 = vrot.slane %v933_v45, 4  ;;  %v970_v50 = vrot.slane %v969_v41, 4  ;;  %v1269_v8 = vpop.xlane.xlu1 %1268 }
 0x27c   : > { %v1225_v20 = vsub.f32 %v1168_v15, %v1219_v4  ;;  %v1671_v10 = vpop.f32.mrb[25].mxu1  ;;  %v919_v21 = vadd.f32 %v918_v17, %v917_v16  ;;  %v1236_v26 = vadd.f32 0.0009, %v1234_v14  ;;  %v982_v5 = vrot.slane %v981_v48, 4 }
 0x27d   : > { %v1237_v23 = vmul.f32 %v1235_v13, %v1231_v44  ;;  %v1171_v27 = vpop.f32.mrb[26].mxu1  ;;  %v935_v4 = vadd.f32 %v934_v46, %v933_v45  ;;  %v947_v18 = vadd.f32 %v946_v47, %v945_v9  ;;  %v971_v52 = vadd.f32 %v970_v50, %v969_v41 }
 0x27e   : > { %v1243_v30 = vadd.f32 %v1225_v20, %v1223_v24  ;;  %v1226_v31 = vsub.f32 %v1171_v27, %v1220_v56  ;;  %920 = vadd.xlane.f32.xlu0 %v919_v21  ;;  %v1672_v32 = vpop.f32.mrb[27].mxu1  ;;  %v1238_v33 = vmul.f32 %v1236_v26, %v1232_v22  ;;  %v983_v53 = vadd.f32 %v982_v5, %v981_v48 }
 0x27f   : > { %v936_v19 = vrot.slane %v935_v4, 2  ;;  %v948_v54 = vrot.slane %v947_v18, 2  ;;  %v960_v55 = vrot.slane %v959_v51, 2  ;;  %v972_v57 = vrot.slane %v971_v52, 2  ;;  %v1293_v26 = vpop.xlane.xlu1 %1292 }
 0x280   : > { %v1245_v35 = vadd.f32 0.0009, %v1243_v30  ;;  %v1244_v36 = vadd.f32 %v1226_v31, %v1224_v6  ;;  %v1303_v6 = vadd.f32 %v1302_v61, %v1301_v40  ;;  %v984_v60 = vrot.slane %v983_v53, 2 }
 0x281   : > { %v937_v63 = vadd.f32 %v936_v19, %v935_v4  ;;  %v949_v1 = vadd.f32 %v948_v54, %v947_v18  ;;  %v961_v25 = vadd.f32 %v960_v55, %v959_v51  ;;  %v973_v7 = vadd.f32 %v972_v57, %v971_v52 }
 0x282   : > { %v1247_v11 = vmul.f32 %v1245_v35, %v1241_v34  ;;  %v1246_v12 = vadd.f32 0.0009, %v1244_v36  ;;  %v985_v13 = vadd.f32 %v984_v60, %v983_v53  ;;  %v1270_v32 = vrot.slane %v1269_v8, 4 }
 0x283   : > { %v938_v44 = vrot.slane %v937_v63, 1  ;;  %v950_v15 = vrot.slane %v949_v1, 1  ;;  %v962_v16 = vrot.slane %v961_v25, 1  ;;  %v974_v20 = vrot.slane %v973_v7, 1  ;;  %v1317_v34 = vpop.xlane.xlu1 %1316 }
 0x284   : > { %1802 = vrcp.f32 %v1247_v11  ;;  %v1248_v28 = vmul.f32 %v1246_v12, %v1242_v37  ;;  %v986_v21 = vrot.slane %v985_v13, 1  ;;  %v1294_v35 = vrot.slane %v1293_v26, 4 }
 0x285   : > { %v939_v10 = vadd.f32 %v938_v44, %v937_v63  ;;  %v963_v27 = vadd.f32 %v962_v16, %v961_v25  ;;  %v975_v30 = vadd.f32 %v974_v20, %v973_v7  ;;  %v1271_v36 = vadd.f32 %v1270_v32, %v1269_v8 }
 0x286   : > { %1804 = vrcp.f32 %v1248_v28  ;;  %v987_v31 = vadd.f32 %v986_v21, %v985_v13  ;;  %v1318_v37 = vrot.slane %v1317_v34, 4  ;;  %v1295_v12 = vadd.f32 %v1294_v35, %v1293_v26 }
 0x287   : > { %v1272_v28 = vrot.slane %v1271_v36, 2  ;;  %v661_v57 = vlaneseq }
 0x28e   : > { %v1803_v29 = vpop.eup %1802 }
 0x28f   : > { %v1251_v38 = vmul.f32 %v1803_v29, %v1237_v23  ;;  %v951_v23 = vadd.f32 %v950_v15, %v949_v1 }
 0x290   : > { %v1805_v59 = vpop.eup %1804 }
 0x291   : > { %v1252_v62 = vmul.f32 %v1805_v59, %v1238_v33  ;;  %v1253_v24 = vsel %vm517_vm0, %v1251_v38, 0.0  ;;  %v1282_v33 = vrot.slane %v1281_v43, 4  ;;  %v1319_v38 = vadd.f32 %v1318_v37, %v1317_v34 }
 0x293   : > { %v1254_v39 = vsel %vm517_vm0, %v1252_v62, 0.0  ;;  %v1283_v11 = vadd.f32 %v1282_v33, %v1281_v43  ;;  %v1320_v40 = vrot.slane %v1319_v38, 2 }
 0x294   : > { %v1255_v2 = vadd.f32 %v1254_v39, %v1253_v24  ;;  %v1296_v24 = vrot.slane %v1295_v12, 2 }
 0x295   : > { %v1284_v59 = vrot.slane %v1283_v11, 2  ;;  %v1321_v47 = vadd.f32 %v1320_v40, %v1319_v38 }
 0x296   : > { %1256 = vadd.xlane.f32.xlu0 %v1255_v2  ;;  %v1273_v2 = vadd.f32 %v1272_v28, %v1271_v36  ;;  %v1297_v9 = vadd.f32 %v1296_v24, %v1295_v12 }
 0x297   : > { %v1285_v42 = vadd.f32 %v1284_v59, %v1283_v11  ;;  %v1322_v52 = vrot.slane %v1321_v47, 1 }
 0x298   : > { %v1274_v48 = vrot.slane %v1273_v2, 1  ;;  %v1298_v4 = vrot.slane %v1297_v9, 1 }
 0x299   : > { %v1286_v50 = vrot.slane %v1285_v42, 1 }
 0x29a   : > { %1304 = vadd.xlane.f32.xlu0 %v1303_v6  ;;  %v1275_v51 = vadd.f32 %v1274_v48, %v1273_v2  ;;  %v1299_v54 = vadd.f32 %v1298_v4, %v1297_v9 }
 0x29b   : > { %v1287_v19 = vadd.f32 %v1286_v50, %v1285_v42 }
 0x30b   : > { %v921_v56 = vpop.xlane.xlu0 %920 }
 0x30c   : > { %v922_v58 = vrot.slane %v921_v56, 4 }
 0x30e   : > { %v923_v0 = vadd.f32 %v922_v58, %v921_v56  ;;  %v1323_v56 = vadd.f32 %v1322_v52, %v1321_v47  ;;  %v662_v58 = vand.u32 127, %v661_v57 }
 0x310   : > { %v924_v3 = vrot.slane %v923_v0, 2  ;;  %vm989_vm2 = vcmp.eq.s32.totalorder %v662_v58, 0  ;;  %vm992_vm3 = vcmp.eq.s32.totalorder %v662_v58, 1  ;;  %vm995_vm4 = vcmp.eq.s32.totalorder %v662_v58, 2 }
 0x311   : > { %vm998_vm5 = vcmp.eq.s32.totalorder %v662_v58, 3  ;;  %vm1001_vm6 = vcmp.eq.s32.totalorder %v662_v58, 4  ;;  %vm1004_vm7 = vcmp.eq.s32.totalorder %v662_v58, 5 }
 0x312   : > { %v925_v14 = vadd.f32 %v924_v3, %v923_v0 }
 0x314   : > { %v926_v17 = vrot.slane %v925_v14, 1 }
 0x316   : > { %v927_v22 = vadd.f32 %v926_v17, %v925_v14 }
 0x318   : > { %1679 = vpush %v927_v22 }
 0x319   : > { %1681 = vpush %v939_v10 }
 0x31a   : > { %1683 = vpush %v951_v23 }
 0x31b   : > { %1685 = vpush %v963_v27 }
 0x31c   : > { %1687 = vpush %v975_v30 }
 0x31d   : > { %1689 = vpush %v987_v31 }
 0x323   : > { %v1257_v29 = vpop.xlane.xlu0 %1256 }
 0x324   : > { %v1258_v62 = vrot.slane %v1257_v29, 4 }
 0x326   : > { %v1259_v39 = vadd.f32 %v1258_v62, %v1257_v29 }
 0x327   : > { %v1305_v61 = vpop.xlane.xlu0 %1304 }
 0x328   : > { %v1260_v6 = vrot.slane %v1259_v39, 2  ;;  %v1306_v41 = vrot.slane %v1305_v61, 4 }
 0x32a   : > { %v1307_v45 = vadd.f32 %v1306_v41, %v1305_v61  ;;  %v1261_v46 = vadd.f32 %v1260_v6, %v1259_v39 }
 0x32c   : > { %v1308_v43 = vrot.slane %v1307_v45, 2  ;;  %v1262_v49 = vrot.slane %v1261_v46, 1 }
 0x32e   : > { %v1309_v5 = vadd.f32 %v1308_v43, %v1307_v45  ;;  %v1263_v18 = vadd.f32 %v1262_v49, %v1261_v46 }
 0x330   : > { %1691 = vpush %v1263_v18  ;;  %v1310_v53 = vrot.slane %v1309_v5, 1 }
 0x331   : > { %1693 = vpush %v1275_v51 }
 0x332   : > { %1695 = vpush %v1287_v19  ;;  %v1311_v55 = vadd.f32 %v1310_v53, %v1309_v5 }
 0x333   : > { %1697 = vpush %v1299_v54 }
 0x334   : > { %1699 = vpush %v1311_v55 }
 0x335   : > { %1701 = vpush %v1323_v56 }
 0x349   : > { %s1680_s0 = spop %1679 }
 0x34a   : > { %v993_v60 = vstv %s1680_s0  ;;  %s1682_s14 = spop %1681  ;;  %s1926_s0 = scalar_lea.vmem %s2508_s15, 32 }
 0x34b   : > { %v990_v63 = vstv %s1682_s14  ;;  %s1684_s1 = spop %1683  ;;  %p1927_p13 = scmp.ne.s32.totalorder %s2508_s15, %s1926_s0 }
 0x34c   : > { %v991_v0 = vsel %vm989_vm2, %v990_v63, 0.0  ;;  %v996_v1 = vstv %s1684_s1  ;;  %s1686_s29 = spop %1685  ;;  %s2012_s14 = smov [#allocation10]  }
 0x34d   : > { %v994_v25 = vsel %vm992_vm3, %v993_v60, %v991_v0  ;;  %v999_v3 = vstv %s1686_s29  ;;  %s1688_s19 = spop %1687  ;;  %p1928_p8 = pnand %p1927_p13, %p2595_p0 }
 0x34e   : > { %v997_v7 = vsel %vm995_vm4, %v996_v1, %v994_v25  ;;  %s1690_s20 = spop %1689  ;;  %v1002_v44 = vstv %s1688_s19  ;;  %s1930_s1 = sshll.u32 %s2012_s14, 4  ;;  %s1931_s1 = int_to_ptr.vmem [resolvable:$false] %s1930_s1 }
 0x34f   : > { %v1000_v8 = vsel %vm998_vm5, %v999_v3, %v997_v7  ;;  %v1005_v13 = vstv %s1690_s20  ;;  %p1929_p10 = pneg %p1928_p8  ;;  %s1932_s29 = scalar_lea.vmem %s1931_s1, 64 }
 0x350   : > { %v1003_v14 = vsel %vm1001_vm6, %v1002_v44, %v1000_v8  ;;  %p1933_p11 = scmp.lt.s32.totalorder %s2508_s15, %s1931_s1  ;;  %p1934_p4 = scmp.lt.s32.totalorder %s1932_s29, %s1926_s0 }
 0x351   : > { %v1006_v15 = vsel %vm1004_vm7, %v1005_v13, %v1003_v14 }
 0x352   : > { %1337 = vst [vmem:[%s390_s26] sm:$0x1] %v1006_v15  ;;  %p1935_p3 = por %p1934_p4, %p1933_p11 }
 0x354   : > { %p1936_p5 = pnand %p1935_p3, %p1929_p10 }
 0x361   : > { %s1692_s10 = spop %1691 }
 0x362   : > { %v1327_v16 = vstv %s1692_s10  ;;  %s1694_s13 = spop %1693 }
 0x363   : > { %v1325_v17 = vstv %s1694_s13  ;;  %s1696_s17 = spop %1695 }
 0x364   : > { %v1326_v20 = vsel %vm989_vm2, %v1325_v17, 0.0  ;;  %s1698_s12 = spop %1697  ;;  %v1329_v21 = vstv %s1696_s17 }
 0x365   : > { %v1328_v10 = vsel %vm992_vm3, %v1327_v16, %v1326_v20  ;;  %s1700_s16 = spop %1699  ;;  %v1331_v23 = vstv %s1698_s12 }
 0x366   : > { %v1330_v22 = vsel %vm995_vm4, %v1329_v21, %v1328_v10  ;;  %v1333_v26 = vstv %s1700_s16  ;;  %s1702_s30 = spop %1701 }
 0x367   : > { %v1332_v27 = vsel %vm998_vm5, %v1331_v23, %v1330_v22  ;;  %v1335_v30 = vstv %s1702_s30 }
 0x368   : > { %v1334_v31 = vsel %vm1001_vm6, %v1333_v26, %v1332_v27 }
 0x369   : > { %v1336_v32 = vsel %vm1004_vm7, %v1335_v30, %v1334_v31 }
 0x36a   : > { %1338 = vst [vmem:[%s390_s26 + $0x1] sm:$0x1] %v1336_v32 }
 0x36b   : > { %1939 = shalt.err (!%p1936_p5)
}
 0x36c   : > { %s1940_s11 = scalar_lea.hbm %s2515_s7, 32  ;;  %s1944_s26 = scalar_lea.hbm %s2567_s6, 64 }
 0x36d   : > { %p1941_p1 = scmp.ne.s32.totalorder %s2515_s7, %s1940_s11  ;;  %p1945_p12 = scmp.lt.u32.totalorder %s2515_s7, %s2567_s6 }
 0x36e   : > { %p1946_p2 = scmp.lt.u32.totalorder %s1944_s26, %s1940_s11  ;;  %p1948_p13 = scmp.lt.u32.totalorder %s1940_s11, %s2515_s7 }
 0x36f   : > { %p1942_p7 = pnand %p1941_p1, %p2595_p0 }
 0x370   : > { %p1947_p6 = por %p1946_p2, %p1945_p12 }
 0x371   : > { %p1943_p9 = pneg %p1942_p7 }
 0x372   : > { %p1949_p8 = por %p1948_p13, %p1947_p6 }
 0x374   : > { %p1950_p10 = pnand %p1949_p8, %p1943_p9 }
 0x376   : > { %1953 = shalt.err (!%p1950_p10)
}
 0x377   : > { %s2013_s17 = smov 16   ;;  %s2014_s12 = smov 1  }
 0x378   : > { %1711 = dma.vmem_to_hbm [thread:$0]  (%p2595_p0), %s2508_s15, 32, %s2515_s7, %s1340_s18, %s2013_s17, %s2013_s17, %s2014_s12  }
 0x379 PF: > { %s1368_s27 = sand.u32 1, %s1988_s21   ;;  %p2596_p11 = scmp.ne.s32.totalorder %s2584_s9, 0 }
 0x37a   : > { %p2597_p4 = scmp.ge.s32.totalorder %s2000_s24, 2  ;;  %s1369_s16 = scalar_lea.sflag [#allocation4], %s1368_s27 }
 0x37c   : > { %p1727_p3 = pnand %p2597_p4, %p2596_p11 }
 0x37e   : > { %1983 = dma.done.wait (!%p1727_p3), %s1369_s16, 32  }
 0x37f   : > { %1985 = vsyncadd (!%p1727_p3), %s1369_s16, 4294967264  ;;  %s2598_s24 = sld [smem:[#allocation16_spill]]  ;;  %s2599_s30 = sld [smem:[#allocation15_spill]] }
 0x380   : > { %s2600_s23 = sld [smem:[#allocation17_spill]]  ;;  %s2601_s21 = smov %s1992_s22 }
 0x385   : > { %p25_p5 = scmp.ge.s32.totalorder %s2598_s24, 4   ;;  %s2602_s22 = smov %s2599_s30 }
 0x387   :  { %27 = sbr.rel (!%p25_p5) target bundleno = 12 (0xc), region = 126 }
 0x38e   :  { %1374 = vsyncpa [#allocation3], 1 }
 0x38f   :  { %1376 = vsyncpa [#allocation3 + $0x1], 1 }
 0x390   :  { %1377 = vsyncpa [#allocation6], 1 }
 0x391   :  { %1379 = vsyncpa [#allocation6 + $0x1], 1 }
 0x392   :  { %1380 = vsyncpa [#allocation9], 1 }
 0x393   :  { %1382 = vsyncpa [#allocation9 + $0x1], 1 }
 0x394   :  { %1383 = vsyncpa [#allocation4], 1 }
 0x395   :  { %1385 = vsyncpa [#allocation4 + $0x1], 1 }

</bundles_post_ra>
